<compile_context>
chip_gen: v6e
topology: v6e:2x2x1
jax: 0.10.0
libtpu: 0.0.40
codegen_flags: <defaults>
</compile_context>

<pallas_src>
import jax
import jax.numpy as jnp
from jax import lax
from jax.experimental import pallas as pl
from jax.experimental.pallas import tpu as pltpu


def _gru_block_kernel(xs_ref, h0_ref, wx_ref, uh_ref, u3_ref, b_ref,
                      hs_ref, h_scr, prex_scr):
    """Processes Tb GRULRCell timesteps per grid iteration.

    xs_ref   : [Tb, B, I]     inputs for this time block (streamed per block)
    h0_ref   : [B, H]         initial hidden state (resident; read at block 0)
    wx_ref   : [I, 3H]        [W1 | W2 | W3]                       (resident)
    uh_ref   : [H, 2H]        [U1 | U2]                            (resident)
    u3_ref   : [H, H]         U3                                   (resident)
    b_ref    : [1, 3H]        [bias_r | bias_gate | bias_update]   (resident)
    hs_ref   : [Tb, B, H]     hidden-state outputs for this time block
    h_scr    : [B, H] f32     carried hidden state (persists across blocks)
    prex_scr : [Tb, B, 3H] f32  hoisted x-projection for this block
    """
    blk = pl.program_id(0)
    Tb, B, I = xs_ref.shape
    H = h_scr.shape[-1]

    @pl.when(blk == 0)
    def _():
        h_scr[...] = h0_ref[...].astype(jnp.float32)

    # ---- Hoisted x-projection: ONE batched MXU matmul over Tb*B rows. ------
    # (B is a sublane multiple, so the (Tb,B,I)->(Tb*B,I) reshape is layout-free.)
    x2d = xs_ref[...].astype(jnp.float32).reshape(Tb * B, I)
    pre_x = jnp.dot(x2d, wx_ref[...], preferred_element_type=jnp.float32)
    pre_x = pre_x + b_ref[...]                 # bias folded in once per block
    prex_scr[...] = pre_x.reshape(Tb, B, 3 * H)

    # ---- Serial recurrence over the Tb steps in this block. ----------------
    def step(t, h):
        px = prex_scr[t]                                        # [B, 3H]
        # Only the h-dependent matmuls live inside the loop.
        uh = jnp.dot(h, uh_ref[...],
                     preferred_element_type=jnp.float32)        # [B, 2H]
        gates = jax.nn.sigmoid(px[:, :2 * H] + uh)              # one call, r|z
        r = gates[:, :H]
        z = gates[:, H:]
        c = jnp.tanh(px[:, 2 * H:] +
                     jnp.dot(r * h, u3_ref[...],
                             preferred_element_type=jnp.float32))
        h_new = z * h + (1.0 - z) * c
        hs_ref[t] = h_new.astype(hs_ref.dtype)                  # lane-dense vst
        return h_new

    unroll = True if Tb <= 16 else 8
    h_final = lax.fori_loop(0, Tb, step, h_scr[...], unroll=unroll)
    h_scr[...] = h_final


def gru_lr_sequence(xs, h0, W1, W2, W3, U1, U2, U3,
                    bias_r, bias_gate, bias_update, *, time_block=8):
    """Apply the full-rank GRULRCell over a [T, B, I] sequence in one kernel."""
    T, B, I = xs.shape
    H = h0.shape[-1]

    # Largest time-block size <= time_block that divides T.
    Tb = max(1, min(time_block, T))
    while T % Tb:
        Tb -= 1

    # Host-side parameter packing (done once; outside the hot loop).
    wx = jnp.concatenate([W1, W2, W3], axis=1)                       # [I, 3H]
    uh = jnp.concatenate([U1, U2], axis=1)                           # [H, 2H]
    b = jnp.concatenate([bias_r, bias_gate, bias_update], axis=1)    # [1, 3H]

    return pl.pallas_call(
        _gru_block_kernel,
        out_shape=jax.ShapeDtypeStruct((T, B, H), xs.dtype),
        grid_spec=pltpu.PrefetchScalarGridSpec(
            num_scalar_prefetch=0,
            grid=(T // Tb,),
            in_specs=[
                pl.BlockSpec((Tb, B, I), lambda t: (t, 0, 0)),   # xs streams
                pl.BlockSpec((B, H), lambda t: (0, 0)),          # h0 resident
                pl.BlockSpec((I, 3 * H), lambda t: (0, 0)),      # [W1|W2|W3]
                pl.BlockSpec((H, 2 * H), lambda t: (0, 0)),      # [U1|U2]
                pl.BlockSpec((H, H), lambda t: (0, 0)),          # U3
                pl.BlockSpec((1, 3 * H), lambda t: (0, 0)),      # bias
            ],
            out_specs=pl.BlockSpec((Tb, B, H), lambda t: (t, 0, 0)),
            scratch_shapes=[
                pltpu.VMEM((B, H), jnp.float32),            # carried hidden h
                pltpu.VMEM((Tb, B, 3 * H), jnp.float32),    # hoisted x-proj
            ],
        ),
        compiler_params=pltpu.CompilerParams(
            # h_t depends on h_{t-1}: the time axis is strictly serial.
            dimension_semantics=("arbitrary",)),
    )(xs, h0, wx, uh, U3, b)


if __name__ == "__main__":
    # Small, lane/sublane-aligned shapes: B multiple of 8, I/H multiples of 128
    # so gate slices and output stores are lane-dense.  T > Tb exercises the
    # time-blocked grid with a carried hidden state across blocks.
    T, B, I, H = 32, 8, 128, 128

    key = jax.random.PRNGKey(0)
    ks = jax.random.split(key, 8)

    # Parameters with the same shapes / init scale as the PyTorch module.
    W1 = 0.1 * jax.random.normal(ks[0], (I, H), jnp.float32)
    W2 = 0.1 * jax.random.normal(ks[1], (I, H), jnp.float32)
    W3 = 0.1 * jax.random.normal(ks[2], (I, H), jnp.float32)
    U1 = 0.1 * jax.random.normal(ks[3], (H, H), jnp.float32)
    U2 = 0.1 * jax.random.normal(ks[4], (H, H), jnp.float32)
    U3 = 0.1 * jax.random.normal(ks[5], (H, H), jnp.float32)
    bias_r = jnp.ones((1, H), jnp.float32)
    bias_gate = jnp.ones((1, H), jnp.float32)
    bias_update = jnp.ones((1, H), jnp.float32)

    xs = jax.random.normal(ks[6], (T, B, I), jnp.float32)
    h0 = jax.random.normal(ks[7], (B, H), jnp.float32)

    hs = gru_lr_sequence(xs, h0, W1, W2, W3, U1, U2, U3,
                         bias_r, bias_gate, bias_update, time_block=8)
    jax.block_until_ready(hs)

    # Pure-JAX reference replicating GRULRCell.forward (wRank=None, uRank=None)
    # applied step by step over the sequence.
    hi = jax.lax.Precision.HIGHEST

    def cell_ref(h, x):
        r = jax.nn.sigmoid(jnp.dot(x, W1, precision=hi)
                           + jnp.dot(h, U1, precision=hi) + bias_r)
        z = jax.nn.sigmoid(jnp.dot(x, W2, precision=hi)
                           + jnp.dot(h, U2, precision=hi) + bias_gate)
        c = jnp.tanh(jnp.dot(x, W3, precision=hi)
                     + jnp.dot(r * h, U3, precision=hi) + bias_update)
        h_new = z * h + (1.0 - z) * c
        return h_new, h_new

    _, hs_ref = jax.lax.scan(cell_ref, h0, xs)
    assert jnp.allclose(hs, hs_ref, atol=1e-4, rtol=1e-4), (
        float(jnp.max(jnp.abs(hs - hs_ref))))

    # Single-step use (the module's forward(input, state)) is just T == 1.
    h1 = gru_lr_sequence(xs[:1], h0, W1, W2, W3, U1, U2, U3,
                         bias_r, bias_gate, bias_update)[0]
    h1_ref, _ = cell_ref(h0, xs[0])
    assert jnp.allclose(h1, h1_ref, atol=1e-4, rtol=1e-4)

    print("KERNEL_OK")
</pallas_src>

<mosaic_0001>
module attributes {stable_mosaic.version = 11 : i64} {
  func.func @_gru_block_kernel(%arg0: i32, %arg1: memref<8x8x128xf32, #tpu.memory_space<vmem>>, %arg2: memref<8x128xf32, #tpu.memory_space<vmem>>, %arg3: memref<128x384xf32, #tpu.memory_space<vmem>>, %arg4: memref<128x256xf32, #tpu.memory_space<vmem>>, %arg5: memref<128x128xf32, #tpu.memory_space<vmem>>, %arg6: memref<1x384xf32, #tpu.memory_space<vmem>>, %arg7: memref<8x8x128xf32, #tpu.memory_space<vmem>>, %arg8: memref<8x128xf32, #tpu.memory_space<vmem>>, %arg9: memref<8x8x384xf32, #tpu.memory_space<vmem>>) attributes {dimension_semantics = [#tpu.dimension_semantics<arbitrary>], iteration_bounds = array<i64: 4>, scalar_prefetch = 0 : i64, scratch_operands = 2 : i64, tpu.core_type = #tpu.core_type<tc>, window_params = [{transform_indices = @transform_0, window_bounds = array<i64: 8, 8, 128>}, {pipeline_mode = #tpu.pipeline_mode<synchronous>, transform_indices = @transform_1, window_bounds = array<i64: 8, 128>}, {pipeline_mode = #tpu.pipeline_mode<synchronous>, transform_indices = @transform_2, window_bounds = array<i64: 128, 384>}, {pipeline_mode = #tpu.pipeline_mode<synchronous>, transform_indices = @transform_3, window_bounds = array<i64: 128, 256>}, {pipeline_mode = #tpu.pipeline_mode<synchronous>, transform_indices = @transform_4, window_bounds = array<i64: 128, 128>}, {pipeline_mode = #tpu.pipeline_mode<synchronous>, transform_indices = @transform_5, window_bounds = array<i64: 1, 384>}, {transform_indices = @transform_6, window_bounds = array<i64: 8, 8, 128>}]} {
    %c0_i32 = arith.constant 0 : i32
    %0 = arith.cmpi eq, %arg0, %c0_i32 : i32
    %1 = arith.extui %0 : i1 to i32
    %c0_i32_0 = arith.constant 0 : i32
    %2 = arith.cmpi ne, %1, %c0_i32_0 : i32
    scf.if %2 {
      %c0_111 = arith.constant 0 : index
      %c0_112 = arith.constant 0 : index
      %246 = vector.load %arg2[%c0_111, %c0_112] : memref<8x128xf32, #tpu.memory_space<vmem>>, vector<8x128xf32>
      %c0_113 = arith.constant 0 : index
      %c0_114 = arith.constant 0 : index
      %247 = vector.load %arg8[%c0_113, %c0_114] : memref<8x128xf32, #tpu.memory_space<vmem>>, vector<8x128xf32>
      tpu.vector_store %arg8[%c0_113, %c0_114], %246 {strides = array<i32>} : memref<8x128xf32, #tpu.memory_space<vmem>>, vector<8x128xf32>,
    } else {
    }
    %c0 = arith.constant 0 : index
    %c0_1 = arith.constant 0 : index
    %c0_2 = arith.constant 0 : index
    %3 = vector.load %arg1[%c0, %c0_1, %c0_2] : memref<8x8x128xf32, #tpu.memory_space<vmem>>, vector<8x8x128xf32>
    %4 = vector.shape_cast %3 : vector<8x8x128xf32> to vector<64x128xf32>
    %c0_3 = arith.constant 0 : index
    %c0_4 = arith.constant 0 : index
    %5 = vector.load %arg3[%c0_3, %c0_4] : memref<128x384xf32, #tpu.memory_space<vmem>>, vector<128x384xf32>
    %cst = arith.constant dense<0.000000e+00> : vector<64x384xf32>
    %6 = tpu.matmul %4, %5, %cst {dimension_numbers = #tpu.dot_dimension_numbers<[1], [0], [0], [1], [0, 0, 1, 1], [], []>} : vector<64x128xf32>, vector<128x384xf32>, vector<64x384xf32> -> vector<64x384xf32>
    %c0_5 = arith.constant 0 : index
    %c0_6 = arith.constant 0 : index
    %7 = vector.load %arg6[%c0_5, %c0_6] : memref<1x384xf32, #tpu.memory_space<vmem>>, vector<1x384xf32>
    %8 = vector.broadcast %7 : vector<1x384xf32> to vector<64x384xf32>
    %9 = arith.addf %6, %8 : vector<64x384xf32>
    %10 = vector.shape_cast %9 : vector<64x384xf32> to vector<8x8x384xf32>
    %c0_7 = arith.constant 0 : index
    %c0_8 = arith.constant 0 : index
    %c0_9 = arith.constant 0 : index
    %11 = vector.load %arg9[%c0_7, %c0_8, %c0_9] : memref<8x8x384xf32, #tpu.memory_space<vmem>>, vector<8x8x384xf32>
    tpu.vector_store %arg9[%c0_7, %c0_8, %c0_9], %10 {strides = array<i32>} : memref<8x8x384xf32, #tpu.memory_space<vmem>>, vector<8x8x384xf32>,
    %c0_10 = arith.constant 0 : index
    %c0_11 = arith.constant 0 : index
    %12 = vector.load %arg8[%c0_10, %c0_11] : memref<8x128xf32, #tpu.memory_space<vmem>>, vector<8x128xf32>
    %c0_i32_12 = arith.constant 0 : i32
    %13 = arith.index_cast %c0_i32_12 : i32 to index
    %c0_13 = arith.constant 0 : index
    %c0_14 = arith.constant 0 : index
    %14 = vector.load %arg9[%13, %c0_13, %c0_14] : memref<8x8x384xf32, #tpu.memory_space<vmem>>, vector<1x8x384xf32>
    %15 = vector.shape_cast %14 : vector<1x8x384xf32> to vector<8x384xf32>
    %c0_15 = arith.constant 0 : index
    %c0_16 = arith.constant 0 : index
    %16 = vector.load %arg4[%c0_15, %c0_16] : memref<128x256xf32, #tpu.memory_space<vmem>>, vector<128x256xf32>
    %cst_17 = arith.constant dense<0.000000e+00> : vector<8x256xf32>
    %17 = tpu.matmul %12, %16, %cst_17 {dimension_numbers = #tpu.dot_dimension_numbers<[1], [0], [0], [1], [0, 0, 1, 1], [], []>} : vector<8x128xf32>, vector<128x256xf32>, vector<8x256xf32> -> vector<8x256xf32>
    %18 = vector.extract_strided_slice %15 {offsets = [0, 0], sizes = [8, 256], strides = [1, 1]} : vector<8x384xf32> to vector<8x256xf32>
    %19 = arith.addf %18, %17 : vector<8x256xf32>
    %20 = arith.negf %19 : vector<8x256xf32>
    %21 = math.exp %20 : vector<8x256xf32>
    %cst_18 = arith.constant 1.000000e+00 : f32
    %22 = vector.broadcast %cst_18 : f32 to vector<8x256xf32>
    %23 = arith.addf %22, %21 : vector<8x256xf32>
    %24 = arith.divf %22, %23 : vector<8x256xf32>
    %25 = vector.extract_strided_slice %24 {offsets = [0, 0], sizes = [8, 128], strides = [1, 1]} : vector<8x256xf32> to vector<8x128xf32>
    %26 = vector.extract_strided_slice %24 {offsets = [0, 128], sizes = [8, 128], strides = [1, 1]} : vector<8x256xf32> to vector<8x128xf32>
    %27 = vector.extract_strided_slice %15 {offsets = [0, 256], sizes = [8, 128], strides = [1, 1]} : vector<8x384xf32> to vector<8x128xf32>
    %28 = arith.mulf %25, %12 : vector<8x128xf32>
    %c0_19 = arith.constant 0 : index
    %c0_20 = arith.constant 0 : index
    %29 = vector.load %arg5[%c0_19, %c0_20] : memref<128x128xf32, #tpu.memory_space<vmem>>, vector<128x128xf32>
    %cst_21 = arith.constant dense<0.000000e+00> : vector<8x128xf32>
    %30 = tpu.matmul %28, %29, %cst_21 {dimension_numbers = #tpu.dot_dimension_numbers<[1], [0], [0], [1], [0, 0, 1, 1], [], []>} : vector<8x128xf32>, vector<128x128xf32>, vector<8x128xf32> -> vector<8x128xf32>
    %31 = arith.addf %27, %30 : vector<8x128xf32>
    %32 = math.tanh %31 : vector<8x128xf32>
    %33 = arith.mulf %26, %12 : vector<8x128xf32>
    %cst_22 = arith.constant 1.000000e+00 : f32
    %34 = vector.broadcast %cst_22 : f32 to vector<8x128xf32>
    %35 = arith.subf %34, %26 : vector<8x128xf32>
    %36 = arith.mulf %35, %32 : vector<8x128xf32>
    %37 = arith.addf %33, %36 : vector<8x128xf32>
    %38 = arith.index_cast %c0_i32_12 : i32 to index
    %c0_23 = arith.constant 0 : index
    %c0_24 = arith.constant 0 : index
    %39 = vector.load %arg7[%38, %c0_23, %c0_24] : memref<8x8x128xf32, #tpu.memory_space<vmem>>, vector<1x8x128xf32>
    %40 = vector.shape_cast %39 : vector<1x8x128xf32> to vector<8x128xf32>
    %41 = vector.shape_cast %37 : vector<8x128xf32> to vector<1x8x128xf32>
    tpu.vector_store %arg7[%38, %c0_23, %c0_24], %41 {strides = array<i32>} : memref<8x8x128xf32, #tpu.memory_space<vmem>>, vector<1x8x128xf32>,
    %c1_i32 = arith.constant 1 : i32
    %42 = arith.index_cast %c1_i32 : i32 to index
    %c0_25 = arith.constant 0 : index
    %c0_26 = arith.constant 0 : index
    %43 = vector.load %arg9[%42, %c0_25, %c0_26] : memref<8x8x384xf32, #tpu.memory_space<vmem>>, vector<1x8x384xf32>
    %44 = vector.shape_cast %43 : vector<1x8x384xf32> to vector<8x384xf32>
    %c0_27 = arith.constant 0 : index
    %c0_28 = arith.constant 0 : index
    %45 = vector.load %arg4[%c0_27, %c0_28] : memref<128x256xf32, #tpu.memory_space<vmem>>, vector<128x256xf32>
    %cst_29 = arith.constant dense<0.000000e+00> : vector<8x256xf32>
    %46 = tpu.matmul %37, %45, %cst_29 {dimension_numbers = #tpu.dot_dimension_numbers<[1], [0], [0], [1], [0, 0, 1, 1], [], []>} : vector<8x128xf32>, vector<128x256xf32>, vector<8x256xf32> -> vector<8x256xf32>
    %47 = vector.extract_strided_slice %44 {offsets = [0, 0], sizes = [8, 256], strides = [1, 1]} : vector<8x384xf32> to vector<8x256xf32>
    %48 = arith.addf %47, %46 : vector<8x256xf32>
    %49 = arith.negf %48 : vector<8x256xf32>
    %50 = math.exp %49 : vector<8x256xf32>
    %cst_30 = arith.constant 1.000000e+00 : f32
    %51 = vector.broadcast %cst_30 : f32 to vector<8x256xf32>
    %52 = arith.addf %51, %50 : vector<8x256xf32>
    %53 = arith.divf %51, %52 : vector<8x256xf32>
    %54 = vector.extract_strided_slice %53 {offsets = [0, 0], sizes = [8, 128], strides = [1, 1]} : vector<8x256xf32> to vector<8x128xf32>
    %55 = vector.extract_strided_slice %53 {offsets = [0, 128], sizes = [8, 128], strides = [1, 1]} : vector<8x256xf32> to vector<8x128xf32>
    %56 = vector.extract_strided_slice %44 {offsets = [0, 256], sizes = [8, 128], strides = [1, 1]} : vector<8x384xf32> to vector<8x128xf32>
    %57 = arith.mulf %54, %37 : vector<8x128xf32>
    %c0_31 = arith.constant 0 : index
    %c0_32 = arith.constant 0 : index
    %58 = vector.load %arg5[%c0_31, %c0_32] : memref<128x128xf32, #tpu.memory_space<vmem>>, vector<128x128xf32>
    %cst_33 = arith.constant dense<0.000000e+00> : vector<8x128xf32>
    %59 = tpu.matmul %57, %58, %cst_33 {dimension_numbers = #tpu.dot_dimension_numbers<[1], [0], [0], [1], [0, 0, 1, 1], [], []>} : vector<8x128xf32>, vector<128x128xf32>, vector<8x128xf32> -> vector<8x128xf32>
    %60 = arith.addf %56, %59 : vector<8x128xf32>
    %61 = math.tanh %60 : vector<8x128xf32>
    %62 = arith.mulf %55, %37 : vector<8x128xf32>
    %cst_34 = arith.constant 1.000000e+00 : f32
    %63 = vector.broadcast %cst_34 : f32 to vector<8x128xf32>
    %64 = arith.subf %63, %55 : vector<8x128xf32>
    %65 = arith.mulf %64, %61 : vector<8x128xf32>
    %66 = arith.addf %62, %65 : vector<8x128xf32>
    %67 = arith.index_cast %c1_i32 : i32 to index
    %c0_35 = arith.constant 0 : index
    %c0_36 = arith.constant 0 : index
    %68 = vector.load %arg7[%67, %c0_35, %c0_36] : memref<8x8x128xf32, #tpu.memory_space<vmem>>, vector<1x8x128xf32>
    %69 = vector.shape_cast %68 : vector<1x8x128xf32> to vector<8x128xf32>
    %70 = vector.shape_cast %66 : vector<8x128xf32> to vector<1x8x128xf32>
    tpu.vector_store %arg7[%67, %c0_35, %c0_36], %70 {strides = array<i32>} : memref<8x8x128xf32, #tpu.memory_space<vmem>>, vector<1x8x128xf32>,
    %c2_i32 = arith.constant 2 : i32
    %71 = arith.index_cast %c2_i32 : i32 to index
    %c0_37 = arith.constant 0 : index
    %c0_38 = arith.constant 0 : index
    %72 = vector.load %arg9[%71, %c0_37, %c0_38] : memref<8x8x384xf32, #tpu.memory_space<vmem>>, vector<1x8x384xf32>
    %73 = vector.shape_cast %72 : vector<1x8x384xf32> to vector<8x384xf32>
    %c0_39 = arith.constant 0 : index
    %c0_40 = arith.constant 0 : index
    %74 = vector.load %arg4[%c0_39, %c0_40] : memref<128x256xf32, #tpu.memory_space<vmem>>, vector<128x256xf32>
    %cst_41 = arith.constant dense<0.000000e+00> : vector<8x256xf32>
    %75 = tpu.matmul %66, %74, %cst_41 {dimension_numbers = #tpu.dot_dimension_numbers<[1], [0], [0], [1], [0, 0, 1, 1], [], []>} : vector<8x128xf32>, vector<128x256xf32>, vector<8x256xf32> -> vector<8x256xf32>
    %76 = vector.extract_strided_slice %73 {offsets = [0, 0], sizes = [8, 256], strides = [1, 1]} : vector<8x384xf32> to vector<8x256xf32>
    %77 = arith.addf %76, %75 : vector<8x256xf32>
    %78 = arith.negf %77 : vector<8x256xf32>
    %79 = math.exp %78 : vector<8x256xf32>
    %cst_42 = arith.constant 1.000000e+00 : f32
    %80 = vector.broadcast %cst_42 : f32 to vector<8x256xf32>
    %81 = arith.addf %80, %79 : vector<8x256xf32>
    %82 = arith.divf %80, %81 : vector<8x256xf32>
    %83 = vector.extract_strided_slice %82 {offsets = [0, 0], sizes = [8, 128], strides = [1, 1]} : vector<8x256xf32> to vector<8x128xf32>
    %84 = vector.extract_strided_slice %82 {offsets = [0, 128], sizes = [8, 128], strides = [1, 1]} : vector<8x256xf32> to vector<8x128xf32>
    %85 = vector.extract_strided_slice %73 {offsets = [0, 256], sizes = [8, 128], strides = [1, 1]} : vector<8x384xf32> to vector<8x128xf32>
    %86 = arith.mulf %83, %66 : vector<8x128xf32>
    %c0_43 = arith.constant 0 : index
    %c0_44 = arith.constant 0 : index
    %87 = vector.load %arg5[%c0_43, %c0_44] : memref<128x128xf32, #tpu.memory_space<vmem>>, vector<128x128xf32>
    %cst_45 = arith.constant dense<0.000000e+00> : vector<8x128xf32>
    %88 = tpu.matmul %86, %87, %cst_45 {dimension_numbers = #tpu.dot_dimension_numbers<[1], [0], [0], [1], [0, 0, 1, 1], [], []>} : vector<8x128xf32>, vector<128x128xf32>, vector<8x128xf32> -> vector<8x128xf32>
    %89 = arith.addf %85, %88 : vector<8x128xf32>
    %90 = math.tanh %89 : vector<8x128xf32>
    %91 = arith.mulf %84, %66 : vector<8x128xf32>
    %cst_46 = arith.constant 1.000000e+00 : f32
    %92 = vector.broadcast %cst_46 : f32 to vector<8x128xf32>
    %93 = arith.subf %92, %84 : vector<8x128xf32>
    %94 = arith.mulf %93, %90 : vector<8x128xf32>
    %95 = arith.addf %91, %94 : vector<8x128xf32>
    %96 = arith.index_cast %c2_i32 : i32 to index
    %c0_47 = arith.constant 0 : index
    %c0_48 = arith.constant 0 : index
    %97 = vector.load %arg7[%96, %c0_47, %c0_48] : memref<8x8x128xf32, #tpu.memory_space<vmem>>, vector<1x8x128xf32>
    %98 = vector.shape_cast %97 : vector<1x8x128xf32> to vector<8x128xf32>
    %99 = vector.shape_cast %95 : vector<8x128xf32> to vector<1x8x128xf32>
    tpu.vector_store %arg7[%96, %c0_47, %c0_48], %99 {strides = array<i32>} : memref<8x8x128xf32, #tpu.memory_space<vmem>>, vector<1x8x128xf32>,
    %c3_i32 = arith.constant 3 : i32
    %100 = arith.index_cast %c3_i32 : i32 to index
    %c0_49 = arith.constant 0 : index
    %c0_50 = arith.constant 0 : index
    %101 = vector.load %arg9[%100, %c0_49, %c0_50] : memref<8x8x384xf32, #tpu.memory_space<vmem>>, vector<1x8x384xf32>
    %102 = vector.shape_cast %101 : vector<1x8x384xf32> to vector<8x384xf32>
    %c0_51 = arith.constant 0 : index
    %c0_52 = arith.constant 0 : index
    %103 = vector.load %arg4[%c0_51, %c0_52] : memref<128x256xf32, #tpu.memory_space<vmem>>, vector<128x256xf32>
    %cst_53 = arith.constant dense<0.000000e+00> : vector<8x256xf32>
    %104 = tpu.matmul %95, %103, %cst_53 {dimension_numbers = #tpu.dot_dimension_numbers<[1], [0], [0], [1], [0, 0, 1, 1], [], []>} : vector<8x128xf32>, vector<128x256xf32>, vector<8x256xf32> -> vector<8x256xf32>
    %105 = vector.extract_strided_slice %102 {offsets = [0, 0], sizes = [8, 256], strides = [1, 1]} : vector<8x384xf32> to vector<8x256xf32>
    %106 = arith.addf %105, %104 : vector<8x256xf32>
    %107 = arith.negf %106 : vector<8x256xf32>
    %108 = math.exp %107 : vector<8x256xf32>
    %cst_54 = arith.constant 1.000000e+00 : f32
    %109 = vector.broadcast %cst_54 : f32 to vector<8x256xf32>
    %110 = arith.addf %109, %108 : vector<8x256xf32>
    %111 = arith.divf %109, %110 : vector<8x256xf32>
    %112 = vector.extract_strided_slice %111 {offsets = [0, 0], sizes = [8, 128], strides = [1, 1]} : vector<8x256xf32> to vector<8x128xf32>
    %113 = vector.extract_strided_slice %111 {offsets = [0, 128], sizes = [8, 128], strides = [1, 1]} : vector<8x256xf32> to vector<8x128xf32>
    %114 = vector.extract_strided_slice %102 {offsets = [0, 256], sizes = [8, 128], strides = [1, 1]} : vector<8x384xf32> to vector<8x128xf32>
    %115 = arith.mulf %112, %95 : vector<8x128xf32>
    %c0_55 = arith.constant 0 : index
    %c0_56 = arith.constant 0 : index
    %116 = vector.load %arg5[%c0_55, %c0_56] : memref<128x128xf32, #tpu.memory_space<vmem>>, vector<128x128xf32>
    %cst_57 = arith.constant dense<0.000000e+00> : vector<8x128xf32>
    %117 = tpu.matmul %115, %116, %cst_57 {dimension_numbers = #tpu.dot_dimension_numbers<[1], [0], [0], [1], [0, 0, 1, 1], [], []>} : vector<8x128xf32>, vector<128x128xf32>, vector<8x128xf32> -> vector<8x128xf32>
    %118 = arith.addf %114, %117 : vector<8x128xf32>
    %119 = math.tanh %118 : vector<8x128xf32>
    %120 = arith.mulf %113, %95 : vector<8x128xf32>
    %cst_58 = arith.constant 1.000000e+00 : f32
    %121 = vector.broadcast %cst_58 : f32 to vector<8x128xf32>
    %122 = arith.subf %121, %113 : vector<8x128xf32>
    %123 = arith.mulf %122, %119 : vector<8x128xf32>
    %124 = arith.addf %120, %123 : vector<8x128xf32>
    %125 = arith.index_cast %c3_i32 : i32 to index
    %c0_59 = arith.constant 0 : index
    %c0_60 = arith.constant 0 : index
    %126 = vector.load %arg7[%125, %c0_59, %c0_60] : memref<8x8x128xf32, #tpu.memory_space<vmem>>, vector<1x8x128xf32>
    %127 = vector.shape_cast %126 : vector<1x8x128xf32> to vector<8x128xf32>
    %128 = vector.shape_cast %124 : vector<8x128xf32> to vector<1x8x128xf32>
    tpu.vector_store %arg7[%125, %c0_59, %c0_60], %128 {strides = array<i32>} : memref<8x8x128xf32, #tpu.memory_space<vmem>>, vector<1x8x128xf32>,
    %c4_i32 = arith.constant 4 : i32
    %129 = arith.index_cast %c4_i32 : i32 to index
    %c0_61 = arith.constant 0 : index
    %c0_62 = arith.constant 0 : index
    %130 = vector.load %arg9[%129, %c0_61, %c0_62] : memref<8x8x384xf32, #tpu.memory_space<vmem>>, vector<1x8x384xf32>
    %131 = vector.shape_cast %130 : vector<1x8x384xf32> to vector<8x384xf32>
    %c0_63 = arith.constant 0 : index
    %c0_64 = arith.constant 0 : index
    %132 = vector.load %arg4[%c0_63, %c0_64] : memref<128x256xf32, #tpu.memory_space<vmem>>, vector<128x256xf32>
    %cst_65 = arith.constant dense<0.000000e+00> : vector<8x256xf32>
    %133 = tpu.matmul %124, %132, %cst_65 {dimension_numbers = #tpu.dot_dimension_numbers<[1], [0], [0], [1], [0, 0, 1, 1], [], []>} : vector<8x128xf32>, vector<128x256xf32>, vector<8x256xf32> -> vector<8x256xf32>
    %134 = vector.extract_strided_slice %131 {offsets = [0, 0], sizes = [8, 256], strides = [1, 1]} : vector<8x384xf32> to vector<8x256xf32>
    %135 = arith.addf %134, %133 : vector<8x256xf32>
    %136 = arith.negf %135 : vector<8x256xf32>
    %137 = math.exp %136 : vector<8x256xf32>
    %cst_66 = arith.constant 1.000000e+00 : f32
    %138 = vector.broadcast %cst_66 : f32 to vector<8x256xf32>
    %139 = arith.addf %138, %137 : vector<8x256xf32>
    %140 = arith.divf %138, %139 : vector<8x256xf32>
    %141 = vector.extract_strided_slice %140 {offsets = [0, 0], sizes = [8, 128], strides = [1, 1]} : vector<8x256xf32> to vector<8x128xf32>
    %142 = vector.extract_strided_slice %140 {offsets = [0, 128], sizes = [8, 128], strides = [1, 1]} : vector<8x256xf32> to vector<8x128xf32>
    %143 = vector.extract_strided_slice %131 {offsets = [0, 256], sizes = [8, 128], strides = [1, 1]} : vector<8x384xf32> to vector<8x128xf32>
    %144 = arith.mulf %141, %124 : vector<8x128xf32>
    %c0_67 = arith.constant 0 : index
    %c0_68 = arith.constant 0 : index
    %145 = vector.load %arg5[%c0_67, %c0_68] : memref<128x128xf32, #tpu.memory_space<vmem>>, vector<128x128xf32>
    %cst_69 = arith.constant dense<0.000000e+00> : vector<8x128xf32>
    %146 = tpu.matmul %144, %145, %cst_69 {dimension_numbers = #tpu.dot_dimension_numbers<[1], [0], [0], [1], [0, 0, 1, 1], [], []>} : vector<8x128xf32>, vector<128x128xf32>, vector<8x128xf32> -> vector<8x128xf32>
    %147 = arith.addf %143, %146 : vector<8x128xf32>
    %148 = math.tanh %147 : vector<8x128xf32>
    %149 = arith.mulf %142, %124 : vector<8x128xf32>
    %cst_70 = arith.constant 1.000000e+00 : f32
    %150 = vector.broadcast %cst_70 : f32 to vector<8x128xf32>
    %151 = arith.subf %150, %142 : vector<8x128xf32>
    %152 = arith.mulf %151, %148 : vector<8x128xf32>
    %153 = arith.addf %149, %152 : vector<8x128xf32>
    %154 = arith.index_cast %c4_i32 : i32 to index
    %c0_71 = arith.constant 0 : index
    %c0_72 = arith.constant 0 : index
    %155 = vector.load %arg7[%154, %c0_71, %c0_72] : memref<8x8x128xf32, #tpu.memory_space<vmem>>, vector<1x8x128xf32>
    %156 = vector.shape_cast %155 : vector<1x8x128xf32> to vector<8x128xf32>
    %157 = vector.shape_cast %153 : vector<8x128xf32> to vector<1x8x128xf32>
    tpu.vector_store %arg7[%154, %c0_71, %c0_72], %157 {strides = array<i32>} : memref<8x8x128xf32, #tpu.memory_space<vmem>>, vector<1x8x128xf32>,
    %c5_i32 = arith.constant 5 : i32
    %158 = arith.index_cast %c5_i32 : i32 to index
    %c0_73 = arith.constant 0 : index
    %c0_74 = arith.constant 0 : index
    %159 = vector.load %arg9[%158, %c0_73, %c0_74] : memref<8x8x384xf32, #tpu.memory_space<vmem>>, vector<1x8x384xf32>
    %160 = vector.shape_cast %159 : vector<1x8x384xf32> to vector<8x384xf32>
    %c0_75 = arith.constant 0 : index
    %c0_76 = arith.constant 0 : index
    %161 = vector.load %arg4[%c0_75, %c0_76] : memref<128x256xf32, #tpu.memory_space<vmem>>, vector<128x256xf32>
    %cst_77 = arith.constant dense<0.000000e+00> : vector<8x256xf32>
    %162 = tpu.matmul %153, %161, %cst_77 {dimension_numbers = #tpu.dot_dimension_numbers<[1], [0], [0], [1], [0, 0, 1, 1], [], []>} : vector<8x128xf32>, vector<128x256xf32>, vector<8x256xf32> -> vector<8x256xf32>
    %163 = vector.extract_strided_slice %160 {offsets = [0, 0], sizes = [8, 256], strides = [1, 1]} : vector<8x384xf32> to vector<8x256xf32>
    %164 = arith.addf %163, %162 : vector<8x256xf32>
    %165 = arith.negf %164 : vector<8x256xf32>
    %166 = math.exp %165 : vector<8x256xf32>
    %cst_78 = arith.constant 1.000000e+00 : f32
    %167 = vector.broadcast %cst_78 : f32 to vector<8x256xf32>
    %168 = arith.addf %167, %166 : vector<8x256xf32>
    %169 = arith.divf %167, %168 : vector<8x256xf32>
    %170 = vector.extract_strided_slice %169 {offsets = [0, 0], sizes = [8, 128], strides = [1, 1]} : vector<8x256xf32> to vector<8x128xf32>
    %171 = vector.extract_strided_slice %169 {offsets = [0, 128], sizes = [8, 128], strides = [1, 1]} : vector<8x256xf32> to vector<8x128xf32>
    %172 = vector.extract_strided_slice %160 {offsets = [0, 256], sizes = [8, 128], strides = [1, 1]} : vector<8x384xf32> to vector<8x128xf32>
    %173 = arith.mulf %170, %153 : vector<8x128xf32>
    %c0_79 = arith.constant 0 : index
    %c0_80 = arith.constant 0 : index
    %174 = vector.load %arg5[%c0_79, %c0_80] : memref<128x128xf32, #tpu.memory_space<vmem>>, vector<128x128xf32>
    %cst_81 = arith.constant dense<0.000000e+00> : vector<8x128xf32>
    %175 = tpu.matmul %173, %174, %cst_81 {dimension_numbers = #tpu.dot_dimension_numbers<[1], [0], [0], [1], [0, 0, 1, 1], [], []>} : vector<8x128xf32>, vector<128x128xf32>, vector<8x128xf32> -> vector<8x128xf32>
    %176 = arith.addf %172, %175 : vector<8x128xf32>
    %177 = math.tanh %176 : vector<8x128xf32>
    %178 = arith.mulf %171, %153 : vector<8x128xf32>
    %cst_82 = arith.constant 1.000000e+00 : f32
    %179 = vector.broadcast %cst_82 : f32 to vector<8x128xf32>
    %180 = arith.subf %179, %171 : vector<8x128xf32>
    %181 = arith.mulf %180, %177 : vector<8x128xf32>
    %182 = arith.addf %178, %181 : vector<8x128xf32>
    %183 = arith.index_cast %c5_i32 : i32 to index
    %c0_83 = arith.constant 0 : index
    %c0_84 = arith.constant 0 : index
    %184 = vector.load %arg7[%183, %c0_83, %c0_84] : memref<8x8x128xf32, #tpu.memory_space<vmem>>, vector<1x8x128xf32>
    %185 = vector.shape_cast %184 : vector<1x8x128xf32> to vector<8x128xf32>
    %186 = vector.shape_cast %182 : vector<8x128xf32> to vector<1x8x128xf32>
    tpu.vector_store %arg7[%183, %c0_83, %c0_84], %186 {strides = array<i32>} : memref<8x8x128xf32, #tpu.memory_space<vmem>>, vector<1x8x128xf32>,
    %c6_i32 = arith.constant 6 : i32
    %187 = arith.index_cast %c6_i32 : i32 to index
    %c0_85 = arith.constant 0 : index
    %c0_86 = arith.constant 0 : index
    %188 = vector.load %arg9[%187, %c0_85, %c0_86] : memref<8x8x384xf32, #tpu.memory_space<vmem>>, vector<1x8x384xf32>
    %189 = vector.shape_cast %188 : vector<1x8x384xf32> to vector<8x384xf32>
    %c0_87 = arith.constant 0 : index
    %c0_88 = arith.constant 0 : index
    %190 = vector.load %arg4[%c0_87, %c0_88] : memref<128x256xf32, #tpu.memory_space<vmem>>, vector<128x256xf32>
    %cst_89 = arith.constant dense<0.000000e+00> : vector<8x256xf32>
    %191 = tpu.matmul %182, %190, %cst_89 {dimension_numbers = #tpu.dot_dimension_numbers<[1], [0], [0], [1], [0, 0, 1, 1], [], []>} : vector<8x128xf32>, vector<128x256xf32>, vector<8x256xf32> -> vector<8x256xf32>
    %192 = vector.extract_strided_slice %189 {offsets = [0, 0], sizes = [8, 256], strides = [1, 1]} : vector<8x384xf32> to vector<8x256xf32>
    %193 = arith.addf %192, %191 : vector<8x256xf32>
    %194 = arith.negf %193 : vector<8x256xf32>
    %195 = math.exp %194 : vector<8x256xf32>
    %cst_90 = arith.constant 1.000000e+00 : f32
    %196 = vector.broadcast %cst_90 : f32 to vector<8x256xf32>
    %197 = arith.addf %196, %195 : vector<8x256xf32>
    %198 = arith.divf %196, %197 : vector<8x256xf32>
    %199 = vector.extract_strided_slice %198 {offsets = [0, 0], sizes = [8, 128], strides = [1, 1]} : vector<8x256xf32> to vector<8x128xf32>
    %200 = vector.extract_strided_slice %198 {offsets = [0, 128], sizes = [8, 128], strides = [1, 1]} : vector<8x256xf32> to vector<8x128xf32>
    %201 = vector.extract_strided_slice %189 {offsets = [0, 256], sizes = [8, 128], strides = [1, 1]} : vector<8x384xf32> to vector<8x128xf32>
    %202 = arith.mulf %199, %182 : vector<8x128xf32>
    %c0_91 = arith.constant 0 : index
    %c0_92 = arith.constant 0 : index
    %203 = vector.load %arg5[%c0_91, %c0_92] : memref<128x128xf32, #tpu.memory_space<vmem>>, vector<128x128xf32>
    %cst_93 = arith.constant dense<0.000000e+00> : vector<8x128xf32>
    %204 = tpu.matmul %202, %203, %cst_93 {dimension_numbers = #tpu.dot_dimension_numbers<[1], [0], [0], [1], [0, 0, 1, 1], [], []>} : vector<8x128xf32>, vector<128x128xf32>, vector<8x128xf32> -> vector<8x128xf32>
    %205 = arith.addf %201, %204 : vector<8x128xf32>
    %206 = math.tanh %205 : vector<8x128xf32>
    %207 = arith.mulf %200, %182 : vector<8x128xf32>
    %cst_94 = arith.constant 1.000000e+00 : f32
    %208 = vector.broadcast %cst_94 : f32 to vector<8x128xf32>
    %209 = arith.subf %208, %200 : vector<8x128xf32>
    %210 = arith.mulf %209, %206 : vector<8x128xf32>
    %211 = arith.addf %207, %210 : vector<8x128xf32>
    %212 = arith.index_cast %c6_i32 : i32 to index
    %c0_95 = arith.constant 0 : index
    %c0_96 = arith.constant 0 : index
    %213 = vector.load %arg7[%212, %c0_95, %c0_96] : memref<8x8x128xf32, #tpu.memory_space<vmem>>, vector<1x8x128xf32>
    %214 = vector.shape_cast %213 : vector<1x8x128xf32> to vector<8x128xf32>
    %215 = vector.shape_cast %211 : vector<8x128xf32> to vector<1x8x128xf32>
    tpu.vector_store %arg7[%212, %c0_95, %c0_96], %215 {strides = array<i32>} : memref<8x8x128xf32, #tpu.memory_space<vmem>>, vector<1x8x128xf32>,
    %c7_i32 = arith.constant 7 : i32
    %216 = arith.index_cast %c7_i32 : i32 to index
    %c0_97 = arith.constant 0 : index
    %c0_98 = arith.constant 0 : index
    %217 = vector.load %arg9[%216, %c0_97, %c0_98] : memref<8x8x384xf32, #tpu.memory_space<vmem>>, vector<1x8x384xf32>
    %218 = vector.shape_cast %217 : vector<1x8x384xf32> to vector<8x384xf32>
    %c0_99 = arith.constant 0 : index
    %c0_100 = arith.constant 0 : index
    %219 = vector.load %arg4[%c0_99, %c0_100] : memref<128x256xf32, #tpu.memory_space<vmem>>, vector<128x256xf32>
    %cst_101 = arith.constant dense<0.000000e+00> : vector<8x256xf32>
    %220 = tpu.matmul %211, %219, %cst_101 {dimension_numbers = #tpu.dot_dimension_numbers<[1], [0], [0], [1], [0, 0, 1, 1], [], []>} : vector<8x128xf32>, vector<128x256xf32>, vector<8x256xf32> -> vector<8x256xf32>
    %221 = vector.extract_strided_slice %218 {offsets = [0, 0], sizes = [8, 256], strides = [1, 1]} : vector<8x384xf32> to vector<8x256xf32>
    %222 = arith.addf %221, %220 : vector<8x256xf32>
    %223 = arith.negf %222 : vector<8x256xf32>
    %224 = math.exp %223 : vector<8x256xf32>
    %cst_102 = arith.constant 1.000000e+00 : f32
    %225 = vector.broadcast %cst_102 : f32 to vector<8x256xf32>
    %226 = arith.addf %225, %224 : vector<8x256xf32>
    %227 = arith.divf %225, %226 : vector<8x256xf32>
    %228 = vector.extract_strided_slice %227 {offsets = [0, 0], sizes = [8, 128], strides = [1, 1]} : vector<8x256xf32> to vector<8x128xf32>
    %229 = vector.extract_strided_slice %227 {offsets = [0, 128], sizes = [8, 128], strides = [1, 1]} : vector<8x256xf32> to vector<8x128xf32>
    %230 = vector.extract_strided_slice %218 {offsets = [0, 256], sizes = [8, 128], strides = [1, 1]} : vector<8x384xf32> to vector<8x128xf32>
    %231 = arith.mulf %228, %211 : vector<8x128xf32>
    %c0_103 = arith.constant 0 : index
    %c0_104 = arith.constant 0 : index
    %232 = vector.load %arg5[%c0_103, %c0_104] : memref<128x128xf32, #tpu.memory_space<vmem>>, vector<128x128xf32>
    %cst_105 = arith.constant dense<0.000000e+00> : vector<8x128xf32>
    %233 = tpu.matmul %231, %232, %cst_105 {dimension_numbers = #tpu.dot_dimension_numbers<[1], [0], [0], [1], [0, 0, 1, 1], [], []>} : vector<8x128xf32>, vector<128x128xf32>, vector<8x128xf32> -> vector<8x128xf32>
    %234 = arith.addf %230, %233 : vector<8x128xf32>
    %235 = math.tanh %234 : vector<8x128xf32>
    %236 = arith.mulf %229, %211 : vector<8x128xf32>
    %cst_106 = arith.constant 1.000000e+00 : f32
    %237 = vector.broadcast %cst_106 : f32 to vector<8x128xf32>
    %238 = arith.subf %237, %229 : vector<8x128xf32>
    %239 = arith.mulf %238, %235 : vector<8x128xf32>
    %240 = arith.addf %236, %239 : vector<8x128xf32>
    %241 = arith.index_cast %c7_i32 : i32 to index
    %c0_107 = arith.constant 0 : index
    %c0_108 = arith.constant 0 : index
    %242 = vector.load %arg7[%241, %c0_107, %c0_108] : memref<8x8x128xf32, #tpu.memory_space<vmem>>, vector<1x8x128xf32>
    %243 = vector.shape_cast %242 : vector<1x8x128xf32> to vector<8x128xf32>
    %244 = vector.shape_cast %240 : vector<8x128xf32> to vector<1x8x128xf32>
    tpu.vector_store %arg7[%241, %c0_107, %c0_108], %244 {strides = array<i32>} : memref<8x8x128xf32, #tpu.memory_space<vmem>>, vector<1x8x128xf32>,
    %c8_i32 = arith.constant 8 : i32
    %c0_109 = arith.constant 0 : index
    %c0_110 = arith.constant 0 : index
    %245 = vector.load %arg8[%c0_109, %c0_110] : memref<8x128xf32, #tpu.memory_space<vmem>>, vector<8x128xf32>
    tpu.vector_store %arg8[%c0_109, %c0_110], %240 {strides = array<i32>} : memref<8x128xf32, #tpu.memory_space<vmem>>, vector<8x128xf32>,
    return
  }
  func.func @transform_0(%arg0: i32) -> (i32, i32, i32) {
    %c0_i32 = arith.constant 0 : i32
    %c0_i32_0 = arith.constant 0 : i32
    %c0_i32_1 = arith.constant 0 : i32
    return %arg0, %c0_i32, %c0_i32_0 : i32, i32, i32
  }
  func.func @transform_1(%arg0: i32) -> (i32, i32) {
    %c0_i32 = arith.constant 0 : i32
    %c0_i32_0 = arith.constant 0 : i32
    %c0_i32_1 = arith.constant 0 : i32
    return %c0_i32, %c0_i32_0 : i32, i32
  }
  func.func @transform_2(%arg0: i32) -> (i32, i32) {
    %c0_i32 = arith.constant 0 : i32
    %c0_i32_0 = arith.constant 0 : i32
    %c0_i32_1 = arith.constant 0 : i32
    return %c0_i32, %c0_i32_0 : i32, i32
  }
  func.func @transform_3(%arg0: i32) -> (i32, i32) {
    %c0_i32 = arith.constant 0 : i32
    %c0_i32_0 = arith.constant 0 : i32
    %c0_i32_1 = arith.constant 0 : i32
    return %c0_i32, %c0_i32_0 : i32, i32
  }
  func.func @transform_4(%arg0: i32) -> (i32, i32) {
    %c0_i32 = arith.constant 0 : i32
    %c0_i32_0 = arith.constant 0 : i32
    %c0_i32_1 = arith.constant 0 : i32
    return %c0_i32, %c0_i32_0 : i32, i32
  }
  func.func @transform_5(%arg0: i32) -> (i32, i32) {
    %c0_i32 = arith.constant 0 : i32
    %c0_i32_0 = arith.constant 0 : i32
    %c0_i32_1 = arith.constant 0 : i32
    return %c0_i32, %c0_i32_0 : i32, i32
  }
  func.func @transform_6(%arg0: i32) -> (i32, i32, i32) {
    %c0_i32 = arith.constant 0 : i32
    %c0_i32_0 = arith.constant 0 : i32
    %c0_i32_1 = arith.constant 0 : i32
    return %arg0, %c0_i32, %c0_i32_0 : i32, i32, i32
  }
}

</mosaic_0001>

<bundles_post_ra>
// kernel: tpu_custom_call.1
= control target key start
LH: loop header
LB: loop body
LE: loop exit
PB: predicated region body
PF: predicated region fallthrough
CT: control target
= control target key end

     0   :  { %11 = vsyncpa [#allocation5], 0  ;;  %s4570_s0 = inlined_call_operand.hbm [shape: f32[32,8,128], index: 0, kind: input, shape index: {}]   ;;  %s4571_s1 = inlined_call_operand.hbm [shape: f32[8,128], index: 1, kind: input, shape index: {}]   ;;  %s4572_s2 = inlined_call_operand.hbm [shape: f32[128,384], index: 2, kind: input, shape index: {}]   ;;  %s4573_s3 = inlined_call_operand.hbm [shape: f32[128,256], index: 3, kind: input, shape index: {}]   ;;  %s4574_s4 = inlined_call_operand.hbm [shape: f32[128,128], index: 4, kind: input, shape index: {}]   ;;  %s4575_s5 = inlined_call_operand.vmem [shape: f32[1,384], index: 5, kind: input, shape index: {}]   ;;  %s4576_s6 = inlined_call_operand.hbm [shape: f32[32,8,128], index: 6, kind: output, shape index: {}]  }
   0x1   :  { %13 = vsyncpa [#allocation5 + $0x1], 0 }
   0x2   :  { %14 = vsyncpa [#allocation8], 0 }
   0x3   :  { %15 = vsyncpa [#allocation11], 0 }
   0x4   :  { %16 = vsyncpa [#allocation6], 0 }
   0x5   :  { %18 = vsyncpa [#allocation6 + $0x1], 0  ;;  %s3468_s21 = smov 0   ;;  %s3470_s22 = smov 0  }
   0x6   :  { %s3472_s23 = smov 0   ;;  %s3474_s24 = smov 0  }
   0x7 LB: > { %s3489_s25 = sadd.s32 4294967295, %s3415_s24   ;;  %s2502_s26 = sadd.s32 4294967294, %s3415_s24   ;;  %s3415_s24 = sphi %s3474_s24, %s4666_s24   ;;  %s3411_s23 = sphi %s3472_s23, %s4665_s23   ;;  %s3407_s22 = sphi %s3470_s22, %s4664_s22   ;;  %s3403_s21 = sphi %s3468_s21, %s4663_s21  }
   0x8   : > { %p44_p0 = scmp.ne.s32.totalorder %s3407_s22, %s3403_s21  ;;  %p4577_p1 = scmp.eq.s32.totalorder %s3489_s25, 0 }
   0x9   : > { %p179_p3 = scmp.eq.s32.totalorder %s2502_s26, 3  ;;  %p2503_p5 = scmp.ge.s32.totalorder %s3415_s24, 1 }
   0xa   : > { %p3498_p4 = por %p4577_p1, %p44_p0  ;;  %p186_p7 = scmp.lt.s32.totalorder %s3415_s24, 5 }
   0xb   : > { %p3503_p6 = por %p179_p3, %p44_p0  ;;  %s3417_s30 = smov [#allocation7]  }
   0xc   : > { %s4592_s27 = scalar_select %p3498_p4, 1, 0 }
   0xd   : > { %s4593_s28 = scalar_select %p3503_p6, 1, 0 }
   0xe   : > { %p3509_p9 = pnand %p2503_p5, %p186_p7  ;;  %s199_s7 = sshll.u32 %s3417_s30, 4  ;;  %s200_s7 = int_to_ptr.vmem [resolvable:$true] %s199_s7 }
   0xf   : > { %s3418_s8 = smov [#allocation10]   ;;  %s3419_s11 = smov [#allocation9]  }
  0x10   : > { %s4594_s29 = scalar_select %p3509_p9, 1, 0 }
  0x11   : > { %p3054_p10 = pneg %p3509_p9  ;;  %s222_s9 = sshll.u32 %s3418_s8, 4  ;;  %s223_s9 = int_to_ptr.vmem [resolvable:$true] %s222_s9 }
  0x12   : > { %s209_s12 = sshll.u32 %s3419_s11, 4  ;;  %s3222_s13 = scalar_lea.vmem %s200_s7, 128  ;;  %s210_s12 = int_to_ptr.vmem [resolvable:$true] %s209_s12 }
  0x13   : > { %p3517_p11 = pnand %p3054_p10, %p4577_p1  ;;  %p3223_p13 = scmp.ne.s32.totalorder %s200_s7, %s3222_s13 }
  0x14   : > { %p3230_p5 = scmp.lt.s32.totalorder %s200_s7, %s200_s7  ;;  %p3231_p7 = scmp.lt.s32.totalorder %s3222_s13, %s3222_s13 }
  0x15   : > { %p3213_p12 = pneg %p3517_p11 }
  0x16   : > { %p3232_p8 = por %p3231_p7, %p3230_p5 }
  0x17   : > { %p3225_p0 = pnand %p3223_p13, %p3213_p12 }
  0x19   : > { %p3226_p3 = pneg %p3225_p0 }
  0x1b   : > { %p3233_p10 = pnand %p3232_p8, %p3226_p3 }
  0x1d   : > { %3236 = shalt.err (!%p3233_p10)
}
  0x1e   : > { %3057 = dma.hbm_to_vmem [thread:$0]  (!%p3517_p11), %s4571_s1, 128, %s200_s7, [#allocation8]  }
  0x1f   : > { %s3248_s16 = scalar_lea.vmem %s223_s9, 4096  ;;  %p3256_p13 = scmp.lt.s32.totalorder %s223_s9, %s223_s9 }
  0x20   : > { %p3249_p1 = scmp.ne.s32.totalorder %s223_s9, %s3248_s16  ;;  %p3257_p0 = scmp.lt.s32.totalorder %s3248_s16, %s3248_s16 }
  0x22   : > { %p3251_p2 = pnand %p3249_p1, %p3213_p12  ;;  %p3258_p4 = por %p3257_p0, %p3256_p13 }
  0x24   : > { %p3252_p6 = pneg %p3251_p2 }
  0x26   : > { %p3259_p9 = pnand %p3258_p4, %p3252_p6 }
  0x28   : > { %3262 = shalt.err (!%p3259_p9)
}
  0x29   : > { %s3420_s17 = smov 256   ;;  %s3421_s18 = smov 16  }
  0x2a   : > { %3063 = dma.hbm_to_vmem [thread:$0]  (!%p3517_p11), %s4573_s3, 4096, %s223_s9, [#allocation11], %s3420_s17, %s3420_s17, %s3421_s18  }
  0x2b   : > { %s3274_s26 = scalar_lea.vmem %s210_s12, 6144  ;;  %p3282_p3 = scmp.lt.s32.totalorder %s210_s12, %s210_s12 }
  0x2c   : > { %p3275_p8 = scmp.ne.s32.totalorder %s210_s12, %s3274_s26  ;;  %p3283_p5 = scmp.lt.s32.totalorder %s3274_s26, %s3274_s26 }
  0x2e   : > { %p3277_p1 = pnand %p3275_p8, %p3213_p12  ;;  %p3284_p4 = por %p3283_p5, %p3282_p3 }
  0x30   : > { %p3278_p2 = pneg %p3277_p1 }
  0x32   : > { %p3285_p6 = pnand %p3284_p4, %p3278_p2 }
  0x34   : > { %3288 = shalt.err (!%p3285_p6)
}
  0x35   : > { %s3422_s30 = smov 384   ;;  %s3423_s7 = smov 24  }
  0x36   : > { %3060 = dma.hbm_to_vmem [thread:$0]  (!%p3517_p11), %s4572_s2, 6144, %s210_s12, [#allocation8], %s3422_s30, %s3422_s30, %s3423_s7  }
  0x37   : > { %s3424_s9 = smov [#allocation12]  }
  0x38   : > { %s235_s13 = sshll.u32 %s3424_s9, 4  ;;  %s236_s13 = int_to_ptr.vmem [resolvable:$true] %s235_s13 }
  0x39   : > { %s3300_s14 = scalar_lea.vmem %s236_s13, 2048  ;;  %p3308_p13 = scmp.lt.s32.totalorder %s236_s13, %s236_s13 }
  0x3a   : > { %p3301_p9 = scmp.ne.s32.totalorder %s236_s13, %s3300_s14  ;;  %p3309_p0 = scmp.lt.s32.totalorder %s3300_s14, %s3300_s14 }
  0x3c   : > { %p3303_p7 = pnand %p3301_p9, %p3213_p12  ;;  %p3310_p8 = por %p3309_p0, %p3308_p13 }
  0x3e   : > { %p3304_p10 = pneg %p3303_p7 }
  0x40   : > { %p3311_p1 = pnand %p3310_p8, %p3304_p10 }
  0x42   : > { %3314 = shalt.err (!%p3311_p1)
}
  0x43   : > { %s4580_s15 = smov 128   ;;  %s4581_s12 = smov 8  }
  0x44   : > { %3066 = dma.hbm_to_vmem [thread:$0]  (!%p3517_p11), %s4574_s4, 2048, %s236_s13, [#allocation11], %s4580_s15, %s4580_s15, %s4581_s12  }
  0x45   : > { %s3559_s18 = sadd.s32 1, %s3415_s24   ;;  %s31_s20 = sadd.s32 1, %s3411_s23 }
  0x46   : > { %s28_s19 = ssub.s32 %s3415_s24, %s3559_s18  ;;  %p38_p2 = scmp.ne.s32.totalorder %s3411_s23, %s3407_s22 }
  0x47   : > { %p29_p12 = scmp.eq.s32.totalorder %s28_s19, 0  ;;  %p39_p3 = scmp.eq.s32.totalorder %s3415_s24, 0 }
  0x48   : > { %p4596_p4 = scmp.eq.s32.totalorder %s3489_s25, 3  ;;  %p3079_p9 = scmp.lt.s32.totalorder %s3415_s24, 4 }
  0x49   : > { %s3568_s26 = scalar_select %p29_p12, %s3411_s23, %s31_s20  }
  0x4a   : > { %p40_p5 = por %p39_p3, %p38_p2  ;;  %p3572_p6 = por %p4596_p4, %p38_p2 }
  0x4b   : > { %s252_s30 = sand.u32 1, %s3411_s23   ;;  %s2548_s8 = sshll.u32 %s3415_s24, 10 }
  0x4c   : > { %s4597_s10 = scalar_select %p3572_p6, 1, 0 }
  0x4d   : > { %s2509_s7 = sshll.u32 %s252_s30, 6  ;;  %s3582_s13 = scalar_lea.hbm %s4570_s0, %s2548_s8 }
  0x4e   : > { %s256_s14 = scalar_lea.vmem [#allocation4], %s2509_s7  ;;  %p3586_p11 = pnand %p3079_p9, %p40_p5 }
  0x4f   : > { %s263_s16 = sshll.u32 %s256_s14, 4  ;;  %s3590_s19 = scalar_lea.sflag [#allocation5], %s252_s30  ;;  %s3584_s16 = int_to_ptr.vmem [resolvable:$true] %s263_s16 }
  0x50   : > { %s3315_s20 = scalar_lea.hbm %s3582_s13, 1024  ;;  %p3317_p10 = pneg %p3586_p11 }
  0x51   : > { %p3316_p7 = scmp.ne.s32.totalorder %s3582_s13, %s3315_s20  ;;  %s3320_s7 = scalar_lea.hbm %s4570_s0, 4096 }
  0x52   : > { %p3321_p8 = scmp.lt.s32.totalorder %s3582_s13, %s4570_s0  ;;  %p3322_p1 = scmp.lt.s32.totalorder %s3320_s7, %s3315_s20 }
  0x53   : > { %p3318_p13 = pnand %p3317_p10, %p3316_p7 }
  0x54   : > { %p3323_p12 = por %p3322_p1, %p3321_p8 }
  0x55   : > { %p3319_p0 = pneg %p3318_p13 }
  0x57   : > { %p3324_p2 = pnand %p3323_p12, %p3319_p0 }
  0x59   : > { %3327 = shalt.err (!%p3324_p2)
}
  0x5a   : > { %s3328_s30 = scalar_lea.vmem %s3584_s16, 1024  ;;  %s3427_s15 = smov [#allocation4]  }
  0x5b   : > { %p3329_p3 = scmp.ne.s32.totalorder %s3584_s16, %s3328_s30  ;;  %s3333_s12 = sshll.u32 %s3427_s15, 4  ;;  %s3334_s12 = int_to_ptr.vmem [resolvable:$false] %s3333_s12 }
  0x5c   : > { %s3335_s8 = scalar_lea.vmem %s3334_s12, 2048  ;;  %p3336_p9 = scmp.lt.s32.totalorder %s3584_s16, %s3334_s12 }
  0x5d   : > { %p3331_p5 = pnand %p3329_p3, %p3317_p10  ;;  %p3337_p7 = scmp.lt.s32.totalorder %s3335_s8, %s3328_s30 }
  0x5f   : > { %p3332_p4 = pneg %p3331_p5  ;;  %p3338_p13 = por %p3337_p7, %p3336_p9 }
  0x61   : > { %p3339_p6 = pnand %p3338_p13, %p3332_p4 }
  0x63   : > { %3342 = shalt.err (!%p3339_p6)
}
  0x64   : > { %s4599_s20 = smov 8   ;;  %s4600_s11 = smov 128  }
  0x65   : > { %3070 = dma.hbm_to_vmem [thread:$0]  (!%p3586_p11), %s3582_s13, 1024, %s3584_s16, %s3590_s19, %s4600_s11, %s4600_s11, %s4599_s20  }
  0x66   : > { %p4601_p10 = scmp.ne.s32.totalorder %s4594_s29, 0 }
  0x68   : > { %275 = sbr.rel (%p4601_p10) target bundleno = 3744 (0xea0), region = 44 }
  0x6d   : > { %s3617_s15 = sand.u32 1, %s3407_s22   ;;  %p4602_p6 = scmp.ne.s32.totalorder %s4592_s27, 0 }
  0x6e   : > { %s2513_s12 = sshll.u32 %s3617_s15, 6  ;;  %s278_s7 = scalar_lea.sflag [#allocation5], %s3617_s15 }
  0x6f   : > { %s3621_s9 = scalar_lea.vmem [#allocation4], %s2513_s12 }
  0x70   : > { %3386 = dma.done.wait (%p4602_p6), %s278_s7, 1024  }
  0x71   : > { %3388 = vsyncadd (%p4602_p6), %s278_s7, 4294966272  ;;  %p4603_p11 = scmp.eq.s32.totalorder %s3489_s25, 0 }
  0x73   : > { %3390 = dma.done.wait (%p4603_p11), [#allocation8], 6272   ;;  %p4604_p0 = pmov %p4603_p11 }
  0x75   : > { %3392 = vsyncadd (%p4604_p0), [#allocation8], 4294961024  ;;  %p4605_p8 = pmov %p4604_p0 }
  0x76   : > { %p4606_p1 = pmov %p4604_p0 }
  0x77   : > { %3394 = dma.done.wait (%p4605_p8), [#allocation11], 6144  }
  0x78   : > { %3396 = vsyncadd (%p4606_p1), [#allocation11], 4294961152  ;;  %s3635_s29 = scalar_lea.vmem [#allocation13], %s2513_s12  ;;  %p4607_p12 = scmp.ne.s32.totalorder %s3489_s25, 0 }
  0x7a   : > { %331 = sbr.rel (%p4607_p12) target bundleno = 129 (0x81), region = 68 }
  0x7f   : > { %v332_v0 = vld [vmem:[#allocation7] sm:$0xff] }
  0x80   : > { %333 = vst [vmem:[#allocation2] sm:$0xff] %v332_v0 }
  0x81 PF: > { %v388_v1 = vld [vmem:[#allocation9 + $0x170] sm:$0xff]  ;;  %v387_v2 = vld [vmem:[#allocation9 + $0x168] sm:$0xff]  ;;  %v385_v3 = vld [vmem:[#allocation9 + $0x158] sm:$0xff]  ;;  %v4583_v5 = vmov 0.0   ;;  %vm3429_vm0 = vmmov 0   ;;  %s2549_s16 = sshll.u32 %s3489_s25, 10 }
  0x82   : > { %407 = vmatprep.subr.mxu0 %v388_v1  ;;  %v384_v4 = vld [vmem:[#allocation9 + $0x150] sm:$0xff]  ;;  %471 = vmatprep.mubr.f32.mxu0 %v4583_v5  ;;  %v382_v6 = vld [vmem:[#allocation9 + $0x140] sm:$0xff]  ;;  %v381_v7 = vld [vmem:[#allocation9 + $0x138] sm:$0xff]  ;;  %s2391_s17 = sshll.u32 %s3635_s29, 4  ;;  %s4525_s30 = scalar_lea.hbm %s4576_s6, %s2549_s16  ;;  %s4527_s17 = int_to_ptr.vmem [resolvable:$true] %s2391_s17 }
  0x83   : > { %408 = vmatpush1.msra.mxu0 %v387_v2  ;;  %v379_v8 = vld [vmem:[#allocation9 + $0x128] sm:$0xff]  ;;  %v378_v9 = vld [vmem:[#allocation9 + $0x120] sm:$0xff]  ;;  %v376_v10 = vld [vmem:[#allocation9 + $0x110] sm:$0xff]  ;;  %s2378_s8 = scalar_lea.sflag [#allocation6], %s3617_s15  ;;  %s3343_s20 = scalar_lea.vmem %s4527_s17, 1024 }
  0x84   : > { %409 = vmatprep.subr.mxu0 %v385_v3  ;;  %v375_v11 = vld [vmem:[#allocation9 + $0x108] sm:$0xff]  ;;  %v373_v12 = vld [vmem:[#allocation9 + $0xf8] sm:$0xff]  ;;  %v372_v13 = vld [vmem:[#allocation9 + $0xf0] sm:$0xff]  ;;  %p3344_p2 = scmp.ne.s32.totalorder %s4527_s17, %s3343_s20  ;;  %p4661_p3 = scmp.ne.s32.totalorder %s4597_s10, 0 }
  0x85   : > { %410 = vmatpush1.msra.mxu0 %v384_v4  ;;  %v370_v14 = vld [vmem:[#allocation9 + $0xe0] sm:$0xff]  ;;  %v334_v15 = vld [vmem:[%s3621_s9] sm:$0xff]  ;;  %v367_v17 = vld [vmem:[#allocation9 + $0xc8] sm:$0xff]  ;;  %s3430_s25 = smov [#allocation13]  }
  0x86   : > { %411 = vmatprep.subr.mxu0 %v382_v6  ;;  %v369_v16 = vld [vmem:[#allocation9 + $0xd8] sm:$0xff]  ;;  %2742 = vmatprep.mubr.f32.mxu1 %v334_v15  ;;  %v366_v18 = vld [vmem:[#allocation9 + $0xc0] sm:$0xff]  ;;  %v364_v19 = vld [vmem:[#allocation9 + $0xb0] sm:$0xff]  ;;  %p3345_p5 = pnand %p3344_p2, %p4661_p3  ;;  %s3347_s11 = sshll.u32 %s3430_s25, 4  ;;  %s3348_s11 = int_to_ptr.vmem [resolvable:$false] %s3347_s11 }
  0x87   : > { %412 = vmatpush1.msra.mxu0 %v381_v7  ;;  %v363_v20 = vld [vmem:[#allocation9 + $0xa8] sm:$0xff]  ;;  %v361_v21 = vld [vmem:[#allocation9 + $0x98] sm:$0xff]  ;;  %v360_v22 = vld [vmem:[#allocation9 + $0x90] sm:$0xff]  ;;  %s3349_s12 = scalar_lea.vmem %s3348_s11, 2048  ;;  %p3350_p9 = scmp.lt.s32.totalorder %s4527_s17, %s3348_s11 }
  0x88   : > { %413 = vmatprep.subr.mxu0 %v379_v8  ;;  %v358_v23 = vld [vmem:[#allocation9 + $0x80] sm:$0xff]  ;;  %v357_v24 = vld [vmem:[#allocation9 + $0x78] sm:$0xff]  ;;  %v355_v25 = vld [vmem:[#allocation9 + $0x68] sm:$0xff]  ;;  %p3346_p4 = pneg %p3345_p5  ;;  %p3351_p7 = scmp.lt.s32.totalorder %s3349_s12, %s3343_s20 }
  0x89   : > { %414 = vmatpush1.msra.mxu0 %v378_v9  ;;  %v354_v26 = vld [vmem:[#allocation9 + $0x60] sm:$0xff]  ;;  %v352_v27 = vld [vmem:[#allocation9 + $0x50] sm:$0xff]  ;;  %v351_v28 = vld [vmem:[#allocation9 + $0x48] sm:$0xff] }
  0x8a   : > { %415 = vmatprep.subr.mxu0 %v376_v10  ;;  %v349_v29 = vld [vmem:[#allocation9 + $0x38] sm:$0xff]  ;;  %v348_v30 = vld [vmem:[#allocation9 + $0x30] sm:$0xff]  ;;  %v346_v31 = vld [vmem:[#allocation9 + $0x20] sm:$0xff]  ;;  %p3352_p13 = por %p3351_p7, %p3350_p9 }
  0x8b   : > { %416 = vmatpush1.msra.mxu0 %v375_v11  ;;  %v345_v32 = vld [vmem:[#allocation9 + $0x18] sm:$0xff]  ;;  %v343_v33 = vld [vmem:[#allocation9 + $0x8] sm:$0xff]  ;;  %v342_v34 = vld [vmem:[#allocation9] sm:$0xff] }
  0x8c   : > { %417 = vmatprep.subr.mxu0 %v373_v12  ;;  %v3641_v35 = vld [vmem:[#allocation10 + $0xf8] sm:$0xff]  ;;  %v3643_v36 = vld [vmem:[#allocation10 + $0xf0] sm:$0xff]  ;;  %v3645_v37 = vld [vmem:[#allocation10 + $0xe8] sm:$0xff]  ;;  %p3353_p10 = pnand %p3352_p13, %p3346_p4 }
  0x8d   : > { %418 = vmatpush1.msra.mxu0 %v372_v13  ;;  %v3648_v38 = vld [vmem:[#allocation10 + $0xe0] sm:$0xff]  ;;  %v3655_v40 = vld [vmem:[#allocation10 + $0xd8] sm:$0xff]  ;;  %v3658_v41 = vld [vmem:[#allocation10 + $0xd0] sm:$0xff] }
  0x8e   : > { %419 = vmatprep.subr.mxu0 %v370_v14  ;;  %v3653_v39 = vld [vmem:[%s3621_s9 + $0x8] sm:$0xff]  ;;  %v3661_v42 = vld [vmem:[#allocation10 + $0xc8] sm:$0xff]  ;;  %v3672_v45 = vld [vmem:[#allocation10 + $0xb8] sm:$0xff] }
  0x8f   : > { %420 = vmatpush1.msra.mxu0 %v369_v16  ;;  %v3665_v43 = vld [vmem:[#allocation10 + $0xc0] sm:$0xff]  ;;  %v3670_v44 = vld [vmem:[%s3621_s9 + $0x10] sm:$0xff]  ;;  %v3675_v46 = vld [vmem:[#allocation10 + $0xb0] sm:$0xff] }
  0x90   : > { %421 = vmatprep.subr.mxu0 %v367_v17  ;;  %v3678_v47 = vld [vmem:[#allocation10 + $0xa8] sm:$0xff]  ;;  %v3682_v48 = vld [vmem:[#allocation10 + $0xa0] sm:$0xff]  ;;  %v3687_v49 = vld [vmem:[%s3621_s9 + $0x18] sm:$0xff] }
  0x91   : > { %422 = vmatpush1.msra.mxu0 %v366_v18  ;;  %v3689_v50 = vld [vmem:[#allocation10 + $0x98] sm:$0xff]  ;;  %v3692_v51 = vld [vmem:[#allocation10 + $0x90] sm:$0xff]  ;;  %v3695_v52 = vld [vmem:[#allocation10 + $0x88] sm:$0xff] }
  0x92   : > { %423 = vmatprep.subr.mxu0 %v364_v19  ;;  %v3699_v53 = vld [vmem:[#allocation10 + $0x80] sm:$0xff]  ;;  %v3704_v54 = vld [vmem:[%s3621_s9 + $0x20] sm:$0xff]  ;;  %v3709_v56 = vld [vmem:[#allocation10 + $0x70] sm:$0xff] }
  0x93   : > { %424 = vmatpush1.msra.mxu0 %v363_v20  ;;  %v3706_v55 = vld [vmem:[#allocation10 + $0x78] sm:$0xff]  ;;  %v3712_v57 = vld [vmem:[#allocation10 + $0x68] sm:$0xff]  ;;  %v3716_v58 = vld [vmem:[#allocation10 + $0x60] sm:$0xff] }
  0x94   : > { %425 = vmatprep.subr.mxu0 %v361_v21  ;;  %v3721_v59 = vld [vmem:[%s3621_s9 + $0x28] sm:$0xff]  ;;  %v3723_v60 = vld [vmem:[#allocation10 + $0x58] sm:$0xff]  ;;  %v3726_v61 = vld [vmem:[#allocation10 + $0x50] sm:$0xff] }
  0x95   : > { %426 = vmatpush1.msra.mxu0 %v360_v22  ;;  %v3729_v62 = vld [vmem:[#allocation10 + $0x48] sm:$0xff]  ;;  %v3733_v63 = vld [vmem:[#allocation10 + $0x40] sm:$0xff]  ;;  %v3740_v1 = vld [vmem:[#allocation10 + $0x38] sm:$0xff] }
  0x96   : > { %427 = vmatprep.subr.mxu0 %v358_v23  ;;  %v3738_v0 = vld [vmem:[%s3621_s9 + $0x30] sm:$0xff]  ;;  %v3743_v2 = vld [vmem:[#allocation10 + $0x30] sm:$0xff]  ;;  %v3750_v4 = vld [vmem:[#allocation10 + $0x20] sm:$0xff] }
  0x97   : > { %428 = vmatpush1.msra.mxu0 %v357_v24  ;;  %v3746_v3 = vld [vmem:[#allocation10 + $0x28] sm:$0xff]  ;;  %v3755_v6 = vld [vmem:[%s3621_s9 + $0x38] sm:$0xff]  ;;  %v3757_v7 = vld [vmem:[#allocation10 + $0x18] sm:$0xff] }
  0x98   : > { %429 = vmatprep.subr.mxu0 %v355_v25  ;;  %4608 = vst [vmem:[#allocation18_spill] sm:$0xff] %v3757_v7  ;;  %v3760_v8 = vld [vmem:[#allocation10 + $0x10] sm:$0xff]  ;;  %v3763_v9 = vld [vmem:[#allocation10 + $0x8] sm:$0xff]  ;;  %v3767_v10 = vld [vmem:[#allocation10] sm:$0xff] }
  0x99   : > { %430 = vmatpush1.msra.mxu0 %v354_v26  ;;  %4609 = vst [vmem:[#allocation19_spill] sm:$0xff] %v3760_v8  ;;  %4610 = vst [vmem:[#allocation20_spill] sm:$0xff] %v3763_v9  ;;  %v3771_v11 = vld [vmem:[#allocation2] sm:$0xff]  ;;  %v389_v12 = vld [vmem:[#allocation9 + $0x178] sm:$0xff] }
  0x9a   : > { %431 = vmatprep.subr.mxu0 %v352_v27  ;;  %4611 = vst [vmem:[#allocation21_spill] sm:$0xff] %v3767_v10  ;;  %2710 = vmatprep.subr.mxu1 %v389_v12  ;;  %v386_v13 = vld [vmem:[#allocation9 + $0x160] sm:$0xff]  ;;  %v383_v14 = vld [vmem:[#allocation9 + $0x148] sm:$0xff]  ;;  %v377_v16 = vld [vmem:[#allocation9 + $0x118] sm:$0xff] }
  0x9b   : > { %432 = vmatpush1.msra.mxu0 %v351_v28  ;;  %2711 = vmatpush3.msra.mxu1 %v389_v12  ;;  %v374_v17 = vld [vmem:[#allocation9 + $0x100] sm:$0xff]  ;;  %v371_v18 = vld [vmem:[#allocation9 + $0xe8] sm:$0xff]  ;;  %v368_v19 = vld [vmem:[#allocation9 + $0xd0] sm:$0xff] }
  0x9c   : > { %433 = vmatprep.subr.mxu0 %v349_v29  ;;  %2712 = vmatprep.subr.mxu1 %v386_v13  ;;  %v365_v20 = vld [vmem:[#allocation9 + $0xb8] sm:$0xff]  ;;  %v362_v21 = vld [vmem:[#allocation9 + $0xa0] sm:$0xff]  ;;  %v359_v22 = vld [vmem:[#allocation9 + $0x88] sm:$0xff] }
  0x9d   : > { %434 = vmatpush1.msra.mxu0 %v348_v30  ;;  %2713 = vmatpush3.msra.mxu1 %v386_v13  ;;  %v356_v23 = vld [vmem:[#allocation9 + $0x70] sm:$0xff]  ;;  %v353_v24 = vld [vmem:[#allocation9 + $0x58] sm:$0xff]  ;;  %v350_v25 = vld [vmem:[#allocation9 + $0x40] sm:$0xff]  ;;  %v392_v13 = vlaneseq }
  0x9e   : > { %435 = vmatprep.subr.mxu0 %v346_v31  ;;  %2714 = vmatprep.subr.mxu1 %v383_v14  ;;  %v347_v26 = vld [vmem:[#allocation9 + $0x28] sm:$0xff]  ;;  %v344_v27 = vld [vmem:[#allocation9 + $0x10] sm:$0xff]  ;;  %v3812_v28 = vld [vmem:[#allocation12 + $0x78] sm:$0xff] }
  0x9f   : > { %436 = vmatpush1.msra.mxu0 %v345_v32  ;;  %2715 = vmatpush3.msra.mxu1 %v383_v14  ;;  %v3817_v29 = vld [vmem:[#allocation12 + $0x70] sm:$0xff]  ;;  %v3821_v30 = vld [vmem:[#allocation12 + $0x68] sm:$0xff]  ;;  %v3827_v31 = vld [vmem:[#allocation12 + $0x60] sm:$0xff]  ;;  %v3884_v14 = vshrl.u32 %v392_v13, 7 }
  0xa0   : > { %437 = vmatprep.subr.mxu0 %v343_v33  ;;  %v3831_v32 = vld [vmem:[#allocation12 + $0x58] sm:$0xff]  ;;  %v3837_v33 = vld [vmem:[#allocation12 + $0x50] sm:$0xff]  ;;  %v3878_v12 = vld [vmem:[#allocation12] sm:$0xff] }
  0xa1   : > { %438 = vmatpush1.msra.mxu0 %v342_v34  ;;  %v3841_v34 = vld [vmem:[#allocation12 + $0x48] sm:$0xff] }
  0xa2   : > { %472 = vmatmul.mubr.f32.vlgmr.msra.gmra.mxu0 %v334_v15  ;;  %685 = vmatprep.subr.mxu0 %v3641_v35  ;;  %v380_v15 = vld [vmem:[#allocation9 + $0x130] sm:$0xff] }
  0xa3   : > { %686 = vmatpush1.msra.mxu0 %v3643_v36  ;;  %477 = vmatprep.mubr.f32.mxu0 %v4583_v5 }
  0xa4   : > { %687 = vmatprep.subr.mxu0 %v3645_v37  ;;  %2716 = vmatprep.subr.mxu1 %v380_v15 }
  0xa5   : > { %688 = vmatpush1.msra.mxu0 %v3648_v38  ;;  %2717 = vmatpush3.msra.mxu1 %v380_v15  ;;  %v394_v15 = vsub.s32 0, %v3884_v14 }
  0xa6   : > { %478 = vmatmul.mubr.f32.gmra.mxu0 %v3653_v39  ;;  %689 = vmatprep.subr.mxu0 %v3655_v40 }
  0xa7   : > { %690 = vmatpush1.msra.mxu0 %v3658_v41  ;;  %483 = vmatprep.mubr.f32.mxu0 %v4583_v5 }
  0xa8   : > { %691 = vmatprep.subr.mxu0 %v3661_v42  ;;  %2718 = vmatprep.subr.mxu1 %v377_v16 }
  0xa9   : > { %692 = vmatpush1.msra.mxu0 %v3665_v43  ;;  %2719 = vmatpush3.msra.mxu1 %v377_v16  ;;  %v3890_v16 = vld [vmem:[%s4575_s5] sm:$0x7] }
  0xaa   : > { %484 = vmatmul.mubr.f32.gmra.mxu0 %v3670_v44  ;;  %693 = vmatprep.subr.mxu0 %v3672_v45 }
  0xab   : > { %694 = vmatpush1.msra.mxu0 %v3675_v46  ;;  %489 = vmatprep.mubr.f32.mxu0 %v4583_v5 }
  0xac   : > { %695 = vmatprep.subr.mxu0 %v3678_v47  ;;  %2720 = vmatprep.subr.mxu1 %v374_v17 }
  0xad   : > { %696 = vmatpush1.msra.mxu0 %v3682_v48  ;;  %2721 = vmatpush3.msra.mxu1 %v374_v17 }
  0xae   : > { %490 = vmatmul.mubr.f32.gmra.mxu0 %v3687_v49  ;;  %697 = vmatprep.subr.mxu0 %v3689_v50 }
  0xaf   : > { %698 = vmatpush1.msra.mxu0 %v3692_v51  ;;  %495 = vmatprep.mubr.f32.mxu0 %v4583_v5 }
  0xb0   : > { %699 = vmatprep.subr.mxu0 %v3695_v52  ;;  %2722 = vmatprep.subr.mxu1 %v371_v18 }
  0xb1   : > { %700 = vmatpush1.msra.mxu0 %v3699_v53  ;;  %2723 = vmatpush3.msra.mxu1 %v371_v18  ;;  %v398_v18 = vsub.s32 1, %v3884_v14 }
  0xb2   : > { %496 = vmatmul.mubr.f32.gmra.mxu0 %v3704_v54  ;;  %701 = vmatprep.subr.mxu0 %v3706_v55 }
  0xb3   : > { %702 = vmatpush1.msra.mxu0 %v3709_v56  ;;  %501 = vmatprep.mubr.f32.mxu0 %v4583_v5 }
  0xb4   : > { %703 = vmatprep.subr.mxu0 %v3712_v57  ;;  %2724 = vmatprep.subr.mxu1 %v368_v19 }
  0xb5   : > { %704 = vmatpush1.msra.mxu0 %v3716_v58  ;;  %2725 = vmatpush3.msra.mxu1 %v368_v19 }
  0xb6   : > { %502 = vmatmul.mubr.f32.gmra.mxu0 %v3721_v59  ;;  %705 = vmatprep.subr.mxu0 %v3723_v60 }
  0xb7   : > { %706 = vmatpush1.msra.mxu0 %v3726_v61  ;;  %507 = vmatprep.mubr.f32.mxu0 %v4583_v5 }
  0xb8   : > { %707 = vmatprep.subr.mxu0 %v3729_v62  ;;  %2726 = vmatprep.subr.mxu1 %v365_v20 }
  0xb9   : > { %708 = vmatpush1.msra.mxu0 %v3733_v63  ;;  %2727 = vmatpush3.msra.mxu1 %v365_v20  ;;  %v395_v20 = vrot.slane %v3890_v16, %v394_v15 }
  0xba   : > { %508 = vmatmul.mubr.f32.gmra.mxu0 %v3738_v0  ;;  %709 = vmatprep.subr.mxu0 %v3740_v1 }
  0xbb   : > { %710 = vmatpush1.msra.mxu0 %v3743_v2  ;;  %513 = vmatprep.mubr.f32.mxu0 %v4583_v5 }
  0xbc   : > { %711 = vmatprep.subr.mxu0 %v3746_v3  ;;  %2728 = vmatprep.subr.mxu1 %v362_v21 }
  0xbd   : > { %712 = vmatpush1.msra.mxu0 %v3750_v4  ;;  %2729 = vmatpush3.msra.mxu1 %v362_v21 }
  0xbe   : > { %514 = vmatmul.mubr.f32.gmra.mxu0 %v3755_v6  ;;  %713 = vmatprep.subr.mxu0 %v3757_v7 }
  0xbf   : > { %714 = vmatpush1.msra.mxu0 %v3760_v8  ;;  %749 = vmatprep.mubr.f32.mxu0 %v4583_v5 }
  0xc0   : > { %715 = vmatprep.subr.mxu0 %v3763_v9  ;;  %2730 = vmatprep.subr.mxu1 %v359_v22 }
  0xc1   : > { %716 = vmatpush1.msra.mxu0 %v3767_v10  ;;  %2731 = vmatpush3.msra.mxu1 %v359_v22  ;;  %v3897_v22 = vrot.slane %v3890_v16, %v398_v18 }
  0xc2   : > { %750 = vmatmul.mubr.f32.vlgmr.msra.gmra.mxu0 %v3771_v11  ;;  %900 = vmatprep.subr.mxu0 %v3641_v35 }
  0xc3   : > { %901 = vmatpush1.msra.mxu0 %v3643_v36  ;;  %964 = vmatprep.mubr.f32.mxu0 %v4583_v5 }
  0xc4   : > { %902 = vmatprep.subr.mxu0 %v3645_v37  ;;  %2732 = vmatprep.subr.mxu1 %v356_v23 }
  0xc5   : > { %903 = vmatpush1.msra.mxu0 %v3648_v38  ;;  %2733 = vmatpush3.msra.mxu1 %v356_v23 }
  0xc6   : > { %904 = vmatprep.subr.mxu0 %v3655_v40  ;;  %2734 = vmatprep.subr.mxu1 %v353_v24 }
  0xc7   : > { %905 = vmatpush1.msra.mxu0 %v3658_v41  ;;  %2735 = vmatpush3.msra.mxu1 %v353_v24 }
  0xc8   : > { %906 = vmatprep.subr.mxu0 %v3661_v42  ;;  %2736 = vmatprep.subr.mxu1 %v350_v25 }
  0xc9   : > { %907 = vmatpush1.msra.mxu0 %v3665_v43  ;;  %2737 = vmatpush3.msra.mxu1 %v350_v25 }
  0xca   : > { %908 = vmatprep.subr.mxu0 %v3672_v45  ;;  %2738 = vmatprep.subr.mxu1 %v347_v26 }
  0xcb   : > { %909 = vmatpush1.msra.mxu0 %v3675_v46  ;;  %2739 = vmatpush3.msra.mxu1 %v347_v26 }
  0xcc   : > { %910 = vmatprep.subr.mxu0 %v3678_v47  ;;  %2740 = vmatprep.subr.mxu1 %v344_v27 }
  0xcd   : > { %911 = vmatpush1.msra.mxu0 %v3682_v48  ;;  %2741 = vmatpush3.msra.mxu1 %v344_v27 }
  0xce   : > { %912 = vmatprep.subr.mxu0 %v3689_v50  ;;  %2743 = vmatmul.mubr.f32.vlgmr.msra.gmra.mxu1 %v3653_v39  ;;  %v3850_v39 = vld [vmem:[#allocation12 + $0x38] sm:$0xff] }
  0xcf   : > { %913 = vmatpush1.msra.mxu0 %v3692_v51  ;;  %2754 = vmatprep.subr.mxu1 %v4583_v5 }
  0xd0   : > { %914 = vmatprep.subr.mxu0 %v3695_v52  ;;  %2745 = vmatprep.mubr.f32.mxu1 %v3670_v44  ;;  %v3854_v44 = vld [vmem:[#allocation12 + $0x30] sm:$0xff] }
  0xd1   : > { %915 = vmatpush1.msra.mxu0 %v3699_v53  ;;  %2755 = vmatpush3.msra.mxu1 %v3812_v28 }
  0xd2   : > { %916 = vmatprep.subr.mxu0 %v3706_v55  ;;  %2756 = vmatprep.subr.mxu1 %v4583_v5 }
  0xd3   : > { %917 = vmatpush1.msra.mxu0 %v3709_v56  ;;  %2757 = vmatpush3.msra.mxu1 %v3817_v29 }
  0xd4   : > { %918 = vmatprep.subr.mxu0 %v3712_v57  ;;  %2758 = vmatprep.subr.mxu1 %v4583_v5 }
  0xd5   : > { %919 = vmatpush1.msra.mxu0 %v3716_v58  ;;  %2746 = vmatmul.mubr.f32.gmra.mxu1 %v3687_v49  ;;  %v3856_v49 = vld [vmem:[#allocation12 + $0x28] sm:$0xff] }
  0xd6   : > { %920 = vmatprep.subr.mxu0 %v3723_v60  ;;  %2759 = vmatpush3.msra.mxu1 %v3821_v30 }
  0xd7   : > { %921 = vmatpush1.msra.mxu0 %v3726_v61  ;;  %2748 = vmatprep.mubr.f32.mxu1 %v3704_v54  ;;  %v3862_v54 = vld [vmem:[#allocation12 + $0x20] sm:$0xff] }
  0xd8   : > { %922 = vmatprep.subr.mxu0 %v3729_v62  ;;  %2760 = vmatprep.subr.mxu1 %v4583_v5 }
  0xd9   : > { %923 = vmatpush1.msra.mxu0 %v3733_v63  ;;  %2761 = vmatpush3.msra.mxu1 %v3827_v31 }
  0xda   : > { %924 = vmatprep.subr.mxu0 %v3740_v1  ;;  %2762 = vmatprep.subr.mxu1 %v4583_v5 }
  0xdb   : > { %925 = vmatpush1.msra.mxu0 %v3743_v2  ;;  %2749 = vmatmul.mubr.f32.gmra.mxu1 %v3721_v59  ;;  %v3866_v59 = vld [vmem:[#allocation12 + $0x18] sm:$0xff] }
  0xdc   : > { %926 = vmatprep.subr.mxu0 %v3746_v3  ;;  %2763 = vmatpush3.msra.mxu1 %v3831_v32 }
  0xdd   : > { %927 = vmatpush1.msra.mxu0 %v3750_v4  ;;  %2751 = vmatprep.mubr.f32.mxu1 %v3738_v0  ;;  %v3870_v0 = vld [vmem:[#allocation12 + $0x10] sm:$0xff] }
  0xde   : > { %928 = vmatprep.subr.mxu0 %v3757_v7  ;;  %2764 = vmatprep.subr.mxu1 %v4583_v5 }
  0xdf   : > { %929 = vmatpush1.msra.mxu0 %v3760_v8  ;;  %2765 = vmatpush3.msra.mxu1 %v3837_v33 }
  0xe0   : > { %930 = vmatprep.subr.mxu0 %v3763_v9  ;;  %2766 = vmatprep.subr.mxu1 %v4583_v5 }
  0xe1   : > { %931 = vmatpush1.msra.mxu0 %v3767_v10  ;;  %2752 = vmatmul.mubr.f32.gmra.mxu1 %v3755_v6  ;;  %v3874_v6 = vld [vmem:[#allocation12 + $0x8] sm:$0xff] }
  0xe2   : > { %1116 = vmatprep.subr.mxu0 %v3641_v35  ;;  %2767 = vmatpush3.msra.mxu1 %v3841_v34  ;;  %v3846_v35 = vld [vmem:[#allocation12 + $0x40] sm:$0xff] }
  0xe3   : > { %2768 = vmatprep.subr.mxu1 %v4583_v5  ;;  %2786 = vmatprep.mubr.msk.f32.mxu1 %vm3429_vm0, %v4583_v5 }
  0xe4   : > { %2769 = vmatpush3.msra.mxu1 %v3846_v35 }
  0xe5   : > { %2770 = vmatprep.subr.mxu1 %v4583_v5 }
  0xe6   : > { %2771 = vmatpush3.msra.mxu1 %v3850_v39 }
  0xe7   : > { %2772 = vmatprep.subr.mxu1 %v4583_v5 }
  0xe8   : > { %2773 = vmatpush3.msra.mxu1 %v3854_v44 }
  0xe9   : > { %2774 = vmatprep.subr.mxu1 %v4583_v5 }
  0xea   : > { %2775 = vmatpush3.msra.mxu1 %v3856_v49 }
  0xeb   : > { %2776 = vmatprep.subr.mxu1 %v4583_v5 }
  0xec   : > { %2777 = vmatpush3.msra.mxu1 %v3862_v54 }
  0xed   : > { %2778 = vmatprep.subr.mxu1 %v4583_v5 }
  0xee   : > { %2779 = vmatpush3.msra.mxu1 %v3866_v59 }
  0xef   : > { %2780 = vmatprep.subr.mxu1 %v4583_v5 }
  0xf0   : > { %2781 = vmatpush3.msra.mxu1 %v3870_v0 }
  0xf1   : > { %2782 = vmatprep.subr.mxu1 %v4583_v5 }
  0xf2   : > { %2783 = vmatpush3.msra.mxu1 %v3874_v6 }
  0xf3   : > { %2784 = vmatprep.subr.mxu1 %v4583_v5 }
  0xf4   : > { %2785 = vmatpush3.msra.mxu1 %v3878_v12 }
  0xf5   : > { %2789 = vmatprep.subr.mxu1 %v4583_v5 }
 0x162   : > { %v473_v17 = vpop.f32.mrf.mxu0 }
 0x164   : > { %v3893_v19 = vpop.f32.mrf.mxu0 }
 0x166   : > { %v479_v21 = vpop.f32.mrf.mxu0 }
 0x167   : > { %v3899_v23 = vadd.f32 %v479_v21, %v395_v20 }
 0x168   : > { %v481_v24 = vpop.f32.mrf.mxu0 }
 0x169   : > { %4612 = vst [vmem:[#allocation22_spill] sm:$0xff] %v3899_v23  ;;  %v3902_v25 = vadd.f32 %v481_v24, %v3897_v22 }
 0x16a   : > { %v485_v26 = vpop.f32.mrf.mxu0 }
 0x16b   : > { %4613 = vst [vmem:[#allocation23_spill] sm:$0xff] %v3902_v25  ;;  %v3904_v27 = vadd.f32 %v485_v26, %v395_v20 }
 0x16c   : > { %v487_v13 = vpop.f32.mrf.mxu0 }
 0x16d   : > { %4614 = vst [vmem:[#allocation24_spill] sm:$0xff] %v3904_v27  ;;  %v3907_v5 = vadd.f32 %v487_v13, %v3897_v22 }
 0x16e   : > { %v491_v10 = vpop.f32.mrf.mxu0 }
 0x16f   : > { %4615 = vst [vmem:[#allocation25_spill] sm:$0xff] %v3907_v5  ;;  %v3909_v9 = vadd.f32 %v491_v10, %v395_v20 }
 0x170   : > { %v493_v15 = vpop.f32.mrf.mxu0 }
 0x171   : > { %4616 = vst [vmem:[#allocation26_spill] sm:$0xff] %v3909_v9  ;;  %v3912_v18 = vadd.f32 %v493_v15, %v3897_v22 }
 0x172   : > { %v497_v21 = vpop.f32.mrf.mxu0 }
 0x173   : > { %4617 = vst [vmem:[#allocation27_spill] sm:$0xff] %v3912_v18  ;;  %v3914_v23 = vadd.f32 %v497_v21, %v395_v20 }
 0x174   : > { %v499_v8 = vpop.f32.mrf.mxu0 }
 0x175   : > { %4618 = vst [vmem:[#allocation28_spill] sm:$0xff] %v3914_v23  ;;  %v3917_v24 = vadd.f32 %v499_v8, %v3897_v22  ;;  %v474_v8 = vadd.f32 %v473_v17, %v395_v20 }
 0x176   : > { %v503_v26 = vpop.f32.mrf.mxu0 }
 0x177   : > { %4619 = vst [vmem:[#allocation29_spill] sm:$0xff] %v3917_v24  ;;  %v3919_v27 = vadd.f32 %v503_v26, %v395_v20 }
 0x178   : > { %v505_v25 = vpop.f32.mrf.mxu0 }
 0x179   : > { %4620 = vst [vmem:[#allocation30_spill] sm:$0xff] %v3919_v27  ;;  %v3922_v13 = vadd.f32 %v505_v25, %v3897_v22 }
 0x17a   : > { %v509_v10 = vpop.f32.mrf.mxu0 }
 0x17b   : > { %4621 = vst [vmem:[#allocation31_spill] sm:$0xff] %v3922_v13  ;;  %v3924_v9 = vadd.f32 %v509_v10, %v395_v20 }
 0x17c   : > { %v511_v5 = vpop.f32.mrf.mxu0 }
 0x17d   : > { %4622 = vst [vmem:[#allocation32_spill] sm:$0xff] %v3924_v9  ;;  %v3927_v15 = vadd.f32 %v511_v5, %v3897_v22  ;;  %v4626_v5 = vmov 0.0  }
 0x17e   : > { %v515_v21 = vpop.f32.mrf.mxu0 }
 0x17f   : > { %4623 = vst [vmem:[#allocation33_spill] sm:$0xff] %v3927_v15  ;;  %v3929_v23 = vadd.f32 %v515_v21, %v395_v20 }
 0x180   : > { %v517_v18 = vpop.f32.mrf.mxu0 }
 0x181   : > { %4624 = vst [vmem:[#allocation34_spill] sm:$0xff] %v3929_v23  ;;  %v3932_v24 = vadd.f32 %v517_v18, %v3897_v22 }
 0x182   : > { %v751_v26 = vpop.f32.mrf.mxu0 }
 0x183   : > { %4625 = vst [vmem:[#allocation35_spill] sm:$0xff] %v3932_v24  ;;  %v756_v27 = vadd.f32 %v751_v26, %v474_v8 }
 0x185   : > { %v2520_v7 = vmul.f32 -1.442695, %v756_v27 }
 0x187   : > { %3131 = vpow2.f32 %v2520_v7  ;;  %v402_v7 = vsub.s32 2, %v3884_v14 }
 0x18e   : > { %v2744_v17 = vpop.f32.mrf.mxu1 }
 0x190   : > { %v586_v20 = vpop.f32.mrf.mxu1 }
 0x194   : > { %v3132_v25 = vpop.eup %3131 }
 0x195   : > { %v764_v13 = vadd.f32 1.0, %v3132_v25  ;;  %v2747_v27 = vpop.f32.mrf.mxu1 }
 0x197   : > { %3133 = vrcp.f32 %v764_v13 }
 0x1a4   : > { %v3134_v10 = vpop.eup %3133 }
 0x1a5   : > { %v770_v9 = vmul.f32 %v3134_v10, %v3771_v11 }
 0x1a7   : > { %2787 = vmatmul.mubr.f32.vlgmr.msra.gmra.mxu1 %v770_v9  ;;  %v3966_v9 = vrot.slane %v3890_v16, %v402_v7  ;;  %v596_v16 = vpop.f32.mrf.mxu1 }
 0x1a8   : > { %2790 = vmatpush3.msra.mxu1 %v3812_v28  ;;  %2821 = vmatprep.mubr.msk.f32.mxu1 %vm3429_vm0, %v4626_v5 }
 0x1a9   : > { %2791 = vmatprep.subr.mxu1 %v4626_v5  ;;  %4627 = vst [vmem:[#allocation36_spill] sm:$0xff] %v3966_v9  ;;  %v3973_v14 = vadd.f32 %v2744_v17, %v3966_v9  ;;  %v3977_v18 = vadd.f32 %v2747_v27, %v3966_v9  ;;  %v3980_v13 = vadd.f32 %v596_v16, %v3966_v9  ;;  %v2750_v21 = vpop.f32.mrf.mxu1  ;;  %v753_v17 = vpop.f32.mrf.mxu0 }
 0x1aa   : > { %2792 = vmatpush3.msra.mxu1 %v3817_v29  ;;  %v3983_v8 = vadd.f32 %v2750_v21, %v3966_v9  ;;  %v476_v27 = vadd.f32 %v3893_v19, %v3897_v22 }
 0x1ab   : > { %2793 = vmatprep.subr.mxu1 %v4626_v5  ;;  %4628 = vst [vmem:[#allocation37_spill] sm:$0xff] %v3977_v18  ;;  %4629 = vst [vmem:[#allocation38_spill] sm:$0xff] %v3980_v13  ;;  %v606_v26 = vpop.f32.mrf.mxu1 }
 0x1ac   : > { %2794 = vmatpush3.msra.mxu1 %v3821_v30  ;;  %4630 = vst [vmem:[#allocation39_spill] sm:$0xff] %v3983_v8  ;;  %v3986_v25 = vadd.f32 %v606_v26, %v3966_v9  ;;  %v757_v24 = vadd.f32 %v753_v17, %v476_v27  ;;  %v587_v26 = vadd.f32 %v586_v20, %v3966_v9  ;;  %v4089_v20 = vld [vmem:[#allocation10 + $0xd8] sm:$0xff]  ;;  %v4107_v17 = vld [vmem:[#allocation10 + $0xa8] sm:$0xff] }
 0x1ad   : > { %2795 = vmatprep.subr.mxu1 %v4626_v5  ;;  %v2753_v10 = vpop.f32.mrf.mxu1 }
 0x1ae   : > { %2796 = vmatpush3.msra.mxu1 %v3827_v31  ;;  %4631 = vst [vmem:[#allocation40_spill] sm:$0xff] %v3986_v25  ;;  %v3989_v7 = vadd.f32 %v2753_v10, %v3966_v9  ;;  %v2521_v23 = vmul.f32 -1.442695, %v757_v24 }
 0x1af   : > { %2797 = vmatprep.subr.mxu1 %v4626_v5  ;;  %v3993_v21 = vpop.f32.mrf.mxu1 }
 0x1b0   : > { %2798 = vmatpush3.msra.mxu1 %v3831_v32  ;;  %4632 = vst [vmem:[#allocation41_spill] sm:$0xff] %v3989_v7  ;;  %3135 = vpow2.f32 %v2521_v23  ;;  %4633 = vst [vmem:[#allocation42_spill] sm:$0xff] %v3993_v21  ;;  %v4081_v23 = vld [vmem:[#allocation10 + $0xf0] sm:$0xff] }
 0x1b1   : > { %2799 = vmatprep.subr.mxu1 %v4626_v5 }
 0x1b2   : > { %2800 = vmatpush3.msra.mxu1 %v3837_v33 }
 0x1b3   : > { %2801 = vmatprep.subr.mxu1 %v4626_v5 }
 0x1b4   : > { %2802 = vmatpush3.msra.mxu1 %v3841_v34 }
 0x1b5   : > { %2803 = vmatprep.subr.mxu1 %v4626_v5 }
 0x1b6   : > { %2804 = vmatpush3.msra.mxu1 %v3846_v35 }
 0x1b7   : > { %2805 = vmatprep.subr.mxu1 %v4626_v5 }
 0x1b8   : > { %2806 = vmatpush3.msra.mxu1 %v3850_v39 }
 0x1b9   : > { %2807 = vmatprep.subr.mxu1 %v4626_v5 }
 0x1ba   : > { %2808 = vmatpush3.msra.mxu1 %v3854_v44 }
 0x1bb   : > { %2809 = vmatprep.subr.mxu1 %v4626_v5 }
 0x1bc   : > { %2810 = vmatpush3.msra.mxu1 %v3856_v49 }
 0x1bd   : > { %2811 = vmatprep.subr.mxu1 %v4626_v5  ;;  %v3136_v16 = vpop.eup %3135 }
 0x1be   : > { %2812 = vmatpush3.msra.mxu1 %v3862_v54  ;;  %v765_v15 = vadd.f32 1.0, %v3136_v16  ;;  %v4640_v16 = vld [vmem:[#allocation24_spill] sm:$0xff] }
 0x1bf   : > { %2813 = vmatprep.subr.mxu1 %v4626_v5 }
 0x1c0   : > { %2814 = vmatpush3.msra.mxu1 %v3866_v59  ;;  %3137 = vrcp.f32 %v765_v15  ;;  %v4083_v15 = vld [vmem:[#allocation10 + $0xe8] sm:$0xff] }
 0x1c1   : > { %2815 = vmatprep.subr.mxu1 %v4626_v5 }
 0x1c2   : > { %2816 = vmatpush3.msra.mxu1 %v3870_v0 }
 0x1c3   : > { %2817 = vmatprep.subr.mxu1 %v4626_v5 }
 0x1c4   : > { %2818 = vmatpush3.msra.mxu1 %v3874_v6 }
 0x1c5   : > { %2819 = vmatprep.subr.mxu1 %v4626_v5 }
 0x1c6   : > { %2820 = vmatpush3.msra.mxu1 %v3878_v12 }
 0x1c7   : > { %2824 = vmatprep.subr.mxu1 %v4626_v5 }
 0x1cd   : > { %v3138_v10 = vpop.eup %3137 }
 0x1ce   : > { %v860_v7 = vsub.f32 1.0, %v3138_v10  ;;  %v859_v19 = vmul.f32 %v3138_v10, %v3771_v11  ;;  %v4079_v11 = vld [vmem:[#allocation10 + $0xf8] sm:$0xff] }
 0x267   : > { %v853_v8 = vpop.f32.mrf.mxu1 }
 0x268   : > { %v857_v25 = vadd.f32 %v853_v8, %v587_v26  ;;  %v4098_v8 = vld [vmem:[#allocation10 + $0xc0] sm:$0xff] }
 0x269   : > { %v2788_v18 = vpop.f32.mrf.mxu1 }
 0x26a   : > { %3139 = vtanh.f32 %v857_v25  ;;  %v4092_v18 = vld [vmem:[#allocation10 + $0xd0] sm:$0xff]  ;;  %v4101_v25 = vld [vmem:[#allocation10 + $0xb8] sm:$0xff] }
 0x277   : > { %v3140_v13 = vpop.eup %3139 }
 0x278   : > { %v861_v22 = vmul.f32 %v3140_v13, %v860_v7  ;;  %v4095_v13 = vld [vmem:[#allocation10 + $0xc8] sm:$0xff]  ;;  %v4104_v7 = vld [vmem:[#allocation10 + $0xb0] sm:$0xff] }
 0x27a   : > { %v3997_v24 = vadd.f32 %v861_v22, %v859_v19 }
 0x27c   : > { %863 = vst [vmem:[%s3635_s29] sm:$0xff] %v3997_v24  ;;  %965 = vmatmul.mubr.f32.vlgmr.msra.gmra.mxu0 %v3997_v24 }
 0x27d   : > { %1117 = vmatpush1.msra.mxu0 %v3643_v36  ;;  %1180 = vmatprep.mubr.f32.mxu0 %v4626_v5  ;;  %v4634_v36 = vld [vmem:[#allocation18_spill] sm:$0xff] }
 0x27e   : > { %1118 = vmatprep.subr.mxu0 %v3645_v37  ;;  %v4635_v37 = vld [vmem:[#allocation19_spill] sm:$0xff] }
 0x27f   : > { %1119 = vmatpush1.msra.mxu0 %v3648_v38  ;;  %v4636_v38 = vld [vmem:[#allocation20_spill] sm:$0xff] }
 0x280   : > { %1120 = vmatprep.subr.mxu0 %v3655_v40  ;;  %v4637_v40 = vld [vmem:[#allocation21_spill] sm:$0xff] }
 0x281   : > { %1121 = vmatpush1.msra.mxu0 %v3658_v41 }
 0x282   : > { %1122 = vmatprep.subr.mxu0 %v3661_v42  ;;  %v4638_v42 = vld [vmem:[#allocation22_spill] sm:$0xff] }
 0x283   : > { %1123 = vmatpush1.msra.mxu0 %v3665_v43 }
 0x284   : > { %1124 = vmatprep.subr.mxu0 %v3672_v45 }
 0x285   : > { %1125 = vmatpush1.msra.mxu0 %v3675_v46 }
 0x286   : > { %1126 = vmatprep.subr.mxu0 %v3678_v47 }
 0x287   : > { %1127 = vmatpush1.msra.mxu0 %v3682_v48 }
 0x288   : > { %1128 = vmatprep.subr.mxu0 %v3689_v50 }
 0x289   : > { %1129 = vmatpush1.msra.mxu0 %v3692_v51 }
 0x28a   : > { %1130 = vmatprep.subr.mxu0 %v3695_v52  ;;  %v4639_v52 = vld [vmem:[#allocation23_spill] sm:$0xff] }
 0x28b   : > { %1131 = vmatpush1.msra.mxu0 %v3699_v53 }
 0x28c   : > { %1132 = vmatprep.subr.mxu0 %v3706_v55 }
 0x28d   : > { %1133 = vmatpush1.msra.mxu0 %v3709_v56 }
 0x28e   : > { %1134 = vmatprep.subr.mxu0 %v3712_v57 }
 0x28f   : > { %1135 = vmatpush1.msra.mxu0 %v3716_v58 }
 0x290   : > { %1136 = vmatprep.subr.mxu0 %v3723_v60 }
 0x291   : > { %1137 = vmatpush1.msra.mxu0 %v3726_v61 }
 0x292   : > { %1138 = vmatprep.subr.mxu0 %v3729_v62 }
 0x293   : > { %1139 = vmatpush1.msra.mxu0 %v3733_v63 }
 0x294   : > { %1140 = vmatprep.subr.mxu0 %v3740_v1 }
 0x295   : > { %1141 = vmatpush1.msra.mxu0 %v3743_v2 }
 0x296   : > { %1142 = vmatprep.subr.mxu0 %v3746_v3 }
 0x297   : > { %1143 = vmatpush1.msra.mxu0 %v3750_v4 }
 0x298   : > { %1144 = vmatprep.subr.mxu0 %v4634_v36 }
 0x299   : > { %1145 = vmatpush1.msra.mxu0 %v4635_v37  ;;  %v4194_v37 = vld [vmem:[#allocation10 + $0x20] sm:$0xff] }
 0x29a   : > { %1146 = vmatprep.subr.mxu0 %v4636_v38  ;;  %v4197_v38 = vld [vmem:[#allocation10 + $0x18] sm:$0xff] }
 0x29b   : > { %1147 = vmatpush1.msra.mxu0 %v4637_v40  ;;  %v4200_v40 = vld [vmem:[#allocation10 + $0x10] sm:$0xff] }
 0x29c   : > { %1332 = vmatprep.subr.mxu0 %v4079_v11 }
 0x33c   : > { %v966_v41 = vpop.f32.mrf.mxu0 }
 0x33d   : > { %v971_v43 = vadd.f32 %v966_v41, %v4638_v42  ;;  %v4203_v41 = vld [vmem:[#allocation10 + $0x8] sm:$0xff]  ;;  %v4206_v42 = vld [vmem:[#allocation10] sm:$0xff] }
 0x33e   : > { %v968_v51 = vpop.f32.mrf.mxu0 }
 0x33f   : > { %v2522_v45 = vmul.f32 -1.442695, %v971_v43  ;;  %v972_v53 = vadd.f32 %v968_v51, %v4639_v52  ;;  %v4642_v52 = vld [vmem:[#allocation38_spill] sm:$0xff] }
 0x341   : > { %3141 = vpow2.f32 %v2522_v45  ;;  %v2523_v55 = vmul.f32 -1.442695, %v972_v53  ;;  %v4641_v45 = vld [vmem:[#allocation25_spill] sm:$0xff] }
 0x34e   : > { %v3142_v46 = vpop.eup %3141 }
 0x34f   : > { %v979_v47 = vadd.f32 1.0, %v3142_v46 }
 0x351   : > { %3143 = vrcp.f32 %v979_v47 }
 0x352   : > { %3145 = vpow2.f32 %v2523_v55 }
 0x35e   : > { %v3144_v48 = vpop.eup %3143 }
 0x35f   : > { %v985_v50 = vmul.f32 %v3144_v48, %v3997_v24  ;;  %v3146_v56 = vpop.eup %3145 }
 0x360   : > { %v980_v57 = vadd.f32 1.0, %v3146_v56 }
 0x361   : > { %2822 = vmatmul.mubr.f32.vlgmr.msra.gmra.mxu1 %v985_v50 }
 0x362   : > { %2825 = vmatpush3.msra.mxu1 %v3812_v28  ;;  %2856 = vmatprep.mubr.msk.f32.mxu1 %vm3429_vm0, %v4626_v5  ;;  %3147 = vrcp.f32 %v980_v57 }
 0x363   : > { %2826 = vmatprep.subr.mxu1 %v4626_v5 }
 0x364   : > { %2827 = vmatpush3.msra.mxu1 %v3817_v29 }
 0x365   : > { %2828 = vmatprep.subr.mxu1 %v4626_v5 }
 0x366   : > { %2829 = vmatpush3.msra.mxu1 %v3821_v30 }
 0x367   : > { %2830 = vmatprep.subr.mxu1 %v4626_v5 }
 0x368   : > { %2831 = vmatpush3.msra.mxu1 %v3827_v31 }
 0x369   : > { %2832 = vmatprep.subr.mxu1 %v4626_v5 }
 0x36a   : > { %2833 = vmatpush3.msra.mxu1 %v3831_v32 }
 0x36b   : > { %2834 = vmatprep.subr.mxu1 %v4626_v5 }
 0x36c   : > { %2835 = vmatpush3.msra.mxu1 %v3837_v33 }
 0x36d   : > { %2836 = vmatprep.subr.mxu1 %v4626_v5 }
 0x36e   : > { %2837 = vmatpush3.msra.mxu1 %v3841_v34 }
 0x36f   : > { %2838 = vmatprep.subr.mxu1 %v4626_v5  ;;  %v3148_v62 = vpop.eup %3147 }
 0x370   : > { %2839 = vmatpush3.msra.mxu1 %v3846_v35  ;;  %v1075_v63 = vsub.f32 1.0, %v3148_v62  ;;  %v1074_v2 = vmul.f32 %v3148_v62, %v3997_v24 }
 0x371   : > { %2840 = vmatprep.subr.mxu1 %v4626_v5 }
 0x372   : > { %2841 = vmatpush3.msra.mxu1 %v3850_v39 }
 0x373   : > { %2842 = vmatprep.subr.mxu1 %v4626_v5 }
 0x374   : > { %2843 = vmatpush3.msra.mxu1 %v3854_v44 }
 0x375   : > { %2844 = vmatprep.subr.mxu1 %v4626_v5 }
 0x376   : > { %2845 = vmatpush3.msra.mxu1 %v3856_v49 }
 0x377   : > { %2846 = vmatprep.subr.mxu1 %v4626_v5 }
 0x378   : > { %2847 = vmatpush3.msra.mxu1 %v3862_v54 }
 0x379   : > { %2848 = vmatprep.subr.mxu1 %v4626_v5 }
 0x37a   : > { %2849 = vmatpush3.msra.mxu1 %v3866_v59 }
 0x37b   : > { %2850 = vmatprep.subr.mxu1 %v4626_v5 }
 0x37c   : > { %2851 = vmatpush3.msra.mxu1 %v3870_v0 }
 0x37d   : > { %2852 = vmatprep.subr.mxu1 %v4626_v5 }
 0x37e   : > { %2853 = vmatpush3.msra.mxu1 %v3874_v6 }
 0x37f   : > { %2854 = vmatprep.subr.mxu1 %v4626_v5 }
 0x380   : > { %2855 = vmatpush3.msra.mxu1 %v3878_v12 }
 0x381   : > { %2859 = vmatprep.subr.mxu1 %v4626_v5 }
 0x421   : > { %v1068_v58 = vpop.f32.mrf.mxu1 }
 0x422   : > { %v1072_v60 = vadd.f32 %v1068_v58, %v3973_v14  ;;  %v4086_v14 = vld [vmem:[#allocation10 + $0xe0] sm:$0xff] }
 0x423   : > { %v2823_v61 = vpop.f32.mrf.mxu1 }
 0x424   : > { %3149 = vtanh.f32 %v1072_v60 }
 0x431   : > { %v3150_v1 = vpop.eup %3149 }
 0x432   : > { %v1076_v3 = vmul.f32 %v3150_v1, %v1075_v63  ;;  %v4643_v1 = vld [vmem:[#allocation26_spill] sm:$0xff] }
 0x434   : > { %v4073_v4 = vadd.f32 %v1076_v3, %v1074_v2 }
 0x436   : > { %2524 = vst [vmem:[%s3635_s29 + $0x8] sm:$0xff] %v4073_v4  ;;  %1181 = vmatmul.mubr.f32.vlgmr.msra.gmra.mxu0 %v4073_v4 }
 0x437   : > { %1396 = vmatprep.mubr.f32.mxu0 %v4626_v5  ;;  %1333 = vmatpush1.msra.mxu0 %v4081_v23 }
 0x438   : > { %1334 = vmatprep.subr.mxu0 %v4083_v15 }
 0x439   : > { %1335 = vmatpush1.msra.mxu0 %v4086_v14 }
 0x43a   : > { %1336 = vmatprep.subr.mxu0 %v4089_v20 }
 0x43b   : > { %1337 = vmatpush1.msra.mxu0 %v4092_v18 }
 0x43c   : > { %1338 = vmatprep.subr.mxu0 %v4095_v13 }
 0x43d   : > { %1339 = vmatpush1.msra.mxu0 %v4098_v8 }
 0x43e   : > { %1340 = vmatprep.subr.mxu0 %v4101_v25 }
 0x43f   : > { %1341 = vmatpush1.msra.mxu0 %v4104_v7 }
 0x440   : > { %1342 = vmatprep.subr.mxu0 %v4107_v17 }
 0x4f6   : > { %v1182_v27 = vpop.f32.mrf.mxu0 }
 0x4f7   : > { %v1187_v26 = vadd.f32 %v1182_v27, %v4640_v16 }
 0x4f8   : > { %v1184_v43 = vpop.f32.mrf.mxu0 }
 0x4f9   : > { %v2525_v10 = vmul.f32 -1.442695, %v1187_v26  ;;  %v1188_v46 = vadd.f32 %v1184_v43, %v4641_v45 }
 0x4fb   : > { %3151 = vpow2.f32 %v2525_v10  ;;  %v2526_v47 = vmul.f32 -1.442695, %v1188_v46  ;;  %v4645_v46 = vld [vmem:[#allocation37_spill] sm:$0xff] }
 0x508   : > { %v3152_v19 = vpop.eup %3151 }
 0x509   : > { %v1195_v22 = vadd.f32 1.0, %v3152_v19  ;;  %v4644_v19 = vld [vmem:[#allocation27_spill] sm:$0xff] }
 0x50b   : > { %3153 = vrcp.f32 %v1195_v22 }
 0x50c   : > { %3155 = vpow2.f32 %v2526_v47 }
 0x518   : > { %v3154_v24 = vpop.eup %3153 }
 0x519   : > { %v1201_v36 = vmul.f32 %v3154_v24, %v4073_v4  ;;  %v3156_v48 = vpop.eup %3155 }
 0x51a   : > { %v1196_v50 = vadd.f32 1.0, %v3156_v48 }
 0x51b   : > { %2857 = vmatmul.mubr.f32.vlgmr.msra.gmra.mxu1 %v1201_v36 }
 0x51c   : > { %2860 = vmatpush3.msra.mxu1 %v3812_v28  ;;  %2891 = vmatprep.mubr.msk.f32.mxu1 %vm3429_vm0, %v4626_v5  ;;  %v4148_v28 = vld [vmem:[#allocation10 + $0xa0] sm:$0xff]  ;;  %3157 = vrcp.f32 %v1196_v50 }
 0x51d   : > { %2861 = vmatprep.subr.mxu1 %v4626_v5  ;;  %1343 = vmatpush1.msra.mxu0 %v4148_v28 }
 0x51e   : > { %2862 = vmatpush3.msra.mxu1 %v3817_v29  ;;  %v4151_v29 = vld [vmem:[#allocation10 + $0x98] sm:$0xff] }
 0x51f   : > { %2863 = vmatprep.subr.mxu1 %v4626_v5  ;;  %1344 = vmatprep.subr.mxu0 %v4151_v29 }
 0x520   : > { %2864 = vmatpush3.msra.mxu1 %v3821_v30  ;;  %v4154_v30 = vld [vmem:[#allocation10 + $0x90] sm:$0xff] }
 0x521   : > { %2865 = vmatprep.subr.mxu1 %v4626_v5  ;;  %1345 = vmatpush1.msra.mxu0 %v4154_v30 }
 0x522   : > { %2866 = vmatpush3.msra.mxu1 %v3827_v31  ;;  %v4157_v31 = vld [vmem:[#allocation10 + $0x88] sm:$0xff] }
 0x523   : > { %2867 = vmatprep.subr.mxu1 %v4626_v5  ;;  %1346 = vmatprep.subr.mxu0 %v4157_v31 }
 0x524   : > { %2868 = vmatpush3.msra.mxu1 %v3831_v32  ;;  %v4160_v32 = vld [vmem:[#allocation10 + $0x80] sm:$0xff] }
 0x525   : > { %2869 = vmatprep.subr.mxu1 %v4626_v5  ;;  %1347 = vmatpush1.msra.mxu0 %v4160_v32 }
 0x526   : > { %2870 = vmatpush3.msra.mxu1 %v3837_v33  ;;  %v4162_v33 = vld [vmem:[#allocation10 + $0x78] sm:$0xff] }
 0x527   : > { %2871 = vmatprep.subr.mxu1 %v4626_v5  ;;  %1348 = vmatprep.subr.mxu0 %v4162_v33 }
 0x528   : > { %2872 = vmatpush3.msra.mxu1 %v3841_v34  ;;  %v4164_v34 = vld [vmem:[#allocation10 + $0x70] sm:$0xff] }
 0x529   : > { %2873 = vmatprep.subr.mxu1 %v4626_v5  ;;  %1349 = vmatpush1.msra.mxu0 %v4164_v34  ;;  %v3158_v56 = vpop.eup %3157 }
 0x52a   : > { %2874 = vmatpush3.msra.mxu1 %v3846_v35  ;;  %v4167_v35 = vld [vmem:[#allocation10 + $0x68] sm:$0xff]  ;;  %v1291_v57 = vsub.f32 1.0, %v3158_v56  ;;  %v1290_v60 = vmul.f32 %v3158_v56, %v4073_v4 }
 0x52b   : > { %2875 = vmatprep.subr.mxu1 %v4626_v5  ;;  %1350 = vmatprep.subr.mxu0 %v4167_v35 }
 0x52c   : > { %2876 = vmatpush3.msra.mxu1 %v3850_v39  ;;  %v4170_v39 = vld [vmem:[#allocation10 + $0x60] sm:$0xff] }
 0x52d   : > { %2877 = vmatprep.subr.mxu1 %v4626_v5  ;;  %1351 = vmatpush1.msra.mxu0 %v4170_v39 }
 0x52e   : > { %2878 = vmatpush3.msra.mxu1 %v3854_v44  ;;  %v4173_v44 = vld [vmem:[#allocation10 + $0x58] sm:$0xff] }
 0x52f   : > { %2879 = vmatprep.subr.mxu1 %v4626_v5  ;;  %1352 = vmatprep.subr.mxu0 %v4173_v44 }
 0x530   : > { %2880 = vmatpush3.msra.mxu1 %v3856_v49  ;;  %v4176_v49 = vld [vmem:[#allocation10 + $0x50] sm:$0xff] }
 0x531   : > { %2881 = vmatprep.subr.mxu1 %v4626_v5  ;;  %1353 = vmatpush1.msra.mxu0 %v4176_v49 }
 0x532   : > { %2882 = vmatpush3.msra.mxu1 %v3862_v54  ;;  %v4179_v54 = vld [vmem:[#allocation10 + $0x48] sm:$0xff] }
 0x533   : > { %2883 = vmatprep.subr.mxu1 %v4626_v5  ;;  %1354 = vmatprep.subr.mxu0 %v4179_v54 }
 0x534   : > { %2884 = vmatpush3.msra.mxu1 %v3866_v59  ;;  %v4182_v59 = vld [vmem:[#allocation10 + $0x40] sm:$0xff] }
 0x535   : > { %2885 = vmatprep.subr.mxu1 %v4626_v5  ;;  %1355 = vmatpush1.msra.mxu0 %v4182_v59 }
 0x536   : > { %2886 = vmatpush3.msra.mxu1 %v3870_v0  ;;  %v4185_v0 = vld [vmem:[#allocation10 + $0x38] sm:$0xff] }
 0x537   : > { %2887 = vmatprep.subr.mxu1 %v4626_v5  ;;  %1356 = vmatprep.subr.mxu0 %v4185_v0 }
 0x538   : > { %2888 = vmatpush3.msra.mxu1 %v3874_v6  ;;  %v4188_v6 = vld [vmem:[#allocation10 + $0x30] sm:$0xff] }
 0x539   : > { %2889 = vmatprep.subr.mxu1 %v4626_v5  ;;  %1357 = vmatpush1.msra.mxu0 %v4188_v6 }
 0x53a   : > { %2890 = vmatpush3.msra.mxu1 %v3878_v12  ;;  %v4191_v12 = vld [vmem:[#allocation10 + $0x28] sm:$0xff] }
 0x53b   : > { %2894 = vmatprep.subr.mxu1 %v4626_v5  ;;  %1358 = vmatprep.subr.mxu0 %v4191_v12 }
 0x53c   : > { %1359 = vmatpush1.msra.mxu0 %v4194_v37 }
 0x53d   : > { %1360 = vmatprep.subr.mxu0 %v4197_v38 }
 0x53e   : > { %1361 = vmatpush1.msra.mxu0 %v4200_v40 }
 0x53f   : > { %1362 = vmatprep.subr.mxu0 %v4203_v41 }
 0x540   : > { %1363 = vmatpush1.msra.mxu0 %v4206_v42 }
 0x541   : > { %1548 = vmatprep.subr.mxu0 %v4079_v11 }
 0x5db   : > { %v1284_v51 = vpop.f32.mrf.mxu1 }
 0x5dc   : > { %v1288_v53 = vadd.f32 %v1284_v51, %v4642_v52 }
 0x5dd   : > { %v2858_v55 = vpop.f32.mrf.mxu1 }
 0x5de   : > { %3159 = vtanh.f32 %v1288_v53 }
 0x5eb   : > { %v3160_v58 = vpop.eup %3159 }
 0x5ec   : > { %v1292_v61 = vmul.f32 %v3160_v58, %v1291_v57  ;;  %v4292_v57 = vld [vmem:[#allocation12 + $0x78] sm:$0xff]  ;;  %v4296_v58 = vld [vmem:[#allocation12 + $0x70] sm:$0xff] }
 0x5ee   : > { %v1293_v62 = vadd.f32 %v1292_v61, %v1290_v60  ;;  %v4300_v60 = vld [vmem:[#allocation12 + $0x68] sm:$0xff]  ;;  %v4304_v61 = vld [vmem:[#allocation12 + $0x60] sm:$0xff] }
 0x5f0   : > { %2527 = vst [vmem:[%s3635_s29 + $0x10] sm:$0xff] %v1293_v62  ;;  %1397 = vmatmul.mubr.f32.vlgmr.msra.gmra.mxu0 %v1293_v62 }
 0x5f1   : > { %1549 = vmatpush1.msra.mxu0 %v4081_v23  ;;  %1612 = vmatprep.mubr.f32.mxu0 %v4626_v5 }
 0x5f2   : > { %1550 = vmatprep.subr.mxu0 %v4083_v15 }
 0x5f3   : > { %1551 = vmatpush1.msra.mxu0 %v4086_v14 }
 0x5f4   : > { %1552 = vmatprep.subr.mxu0 %v4089_v20 }
 0x5f5   : > { %1553 = vmatpush1.msra.mxu0 %v4092_v18 }
 0x5f6   : > { %1554 = vmatprep.subr.mxu0 %v4095_v13 }
 0x5f7   : > { %1555 = vmatpush1.msra.mxu0 %v4098_v8 }
 0x5f8   : > { %1556 = vmatprep.subr.mxu0 %v4101_v25 }
 0x5f9   : > { %1557 = vmatpush1.msra.mxu0 %v4104_v7 }
 0x5fa   : > { %1558 = vmatprep.subr.mxu0 %v4107_v17 }
 0x5fb   : > { %1559 = vmatpush1.msra.mxu0 %v4148_v28 }
 0x5fc   : > { %1560 = vmatprep.subr.mxu0 %v4151_v29 }
 0x5fd   : > { %1561 = vmatpush1.msra.mxu0 %v4154_v30 }
 0x5fe   : > { %1562 = vmatprep.subr.mxu0 %v4157_v31 }
 0x5ff   : > { %1563 = vmatpush1.msra.mxu0 %v4160_v32 }
 0x600   : > { %1564 = vmatprep.subr.mxu0 %v4162_v33 }
 0x601   : > { %1565 = vmatpush1.msra.mxu0 %v4164_v34 }
 0x602   : > { %1566 = vmatprep.subr.mxu0 %v4167_v35 }
 0x603   : > { %1567 = vmatpush1.msra.mxu0 %v4170_v39 }
 0x604   : > { %1568 = vmatprep.subr.mxu0 %v4173_v44 }
 0x605   : > { %1569 = vmatpush1.msra.mxu0 %v4176_v49 }
 0x606   : > { %1570 = vmatprep.subr.mxu0 %v4179_v54 }
 0x607   : > { %1571 = vmatpush1.msra.mxu0 %v4182_v59 }
 0x608   : > { %1572 = vmatprep.subr.mxu0 %v4185_v0 }
 0x609   : > { %1573 = vmatpush1.msra.mxu0 %v4188_v6 }
 0x60a   : > { %1574 = vmatprep.subr.mxu0 %v4191_v12 }
 0x60b   : > { %1575 = vmatpush1.msra.mxu0 %v4194_v37 }
 0x60c   : > { %1576 = vmatprep.subr.mxu0 %v4197_v38 }
 0x60d   : > { %1577 = vmatpush1.msra.mxu0 %v4200_v40 }
 0x60e   : > { %1578 = vmatprep.subr.mxu0 %v4203_v41 }
 0x60f   : > { %1579 = vmatpush1.msra.mxu0 %v4206_v42 }
 0x610   : > { %1764 = vmatprep.subr.mxu0 %v4079_v11 }
 0x6b0   : > { %v1398_v63 = vpop.f32.mrf.mxu0 }
 0x6b1   : > { %v1403_v2 = vadd.f32 %v1398_v63, %v4643_v1  ;;  %v4316_v63 = vld [vmem:[#allocation12 + $0x48] sm:$0xff]  ;;  %v4320_v1 = vld [vmem:[#allocation12 + $0x40] sm:$0xff] }
 0x6b2   : > { %v1400_v10 = vpop.f32.mrf.mxu0 }
 0x6b3   : > { %v2528_v3 = vmul.f32 -1.442695, %v1403_v2  ;;  %v1404_v22 = vadd.f32 %v1400_v10, %v4644_v19  ;;  %v4324_v2 = vld [vmem:[#allocation12 + $0x38] sm:$0xff]  ;;  %v4346_v10 = vld [vmem:[#allocation12 + $0x8] sm:$0xff]  ;;  %v4350_v19 = vld [vmem:[#allocation12] sm:$0xff] }
 0x6b4   : > { %4646 = vst [vmem:[#allocation18_spill] sm:$0xff] %v4350_v19 }
 0x6b5   : > { %3161 = vpow2.f32 %v2528_v3  ;;  %v2529_v24 = vmul.f32 -1.442695, %v1404_v22  ;;  %v4328_v3 = vld [vmem:[#allocation12 + $0x30] sm:$0xff] }
 0x6c2   : > { %v3162_v4 = vpop.eup %3161 }
 0x6c3   : > { %v1411_v27 = vadd.f32 1.0, %v3162_v4  ;;  %v4330_v4 = vld [vmem:[#allocation12 + $0x28] sm:$0xff] }
 0x6c5   : > { %3163 = vrcp.f32 %v1411_v27  ;;  %v4334_v27 = vld [vmem:[#allocation12 + $0x20] sm:$0xff] }
 0x6c6   : > { %3165 = vpow2.f32 %v2529_v24  ;;  %v4647_v24 = vld [vmem:[#allocation28_spill] sm:$0xff] }
 0x6d2   : > { %v3164_v16 = vpop.eup %3163 }
 0x6d3   : > { %v1417_v26 = vmul.f32 %v3164_v16, %v1293_v62  ;;  %v3166_v36 = vpop.eup %3165  ;;  %v4338_v16 = vld [vmem:[#allocation12 + $0x18] sm:$0xff] }
 0x6d4   : > { %v1412_v43 = vadd.f32 1.0, %v3166_v36 }
 0x6d5   : > { %2892 = vmatmul.mubr.f32.vlgmr.msra.gmra.mxu1 %v1417_v26  ;;  %v4342_v26 = vld [vmem:[#allocation12 + $0x10] sm:$0xff] }
 0x6d6   : > { %2926 = vmatprep.mubr.msk.f32.mxu1 %vm3429_vm0, %v4626_v5  ;;  %3167 = vrcp.f32 %v1412_v43  ;;  %2895 = vmatpush3.msra.mxu1 %v4292_v57 }
 0x6d7   : > { %2896 = vmatprep.subr.mxu1 %v4626_v5 }
 0x6d8   : > { %2897 = vmatpush3.msra.mxu1 %v4296_v58 }
 0x6d9   : > { %2898 = vmatprep.subr.mxu1 %v4626_v5 }
 0x6da   : > { %2899 = vmatpush3.msra.mxu1 %v4300_v60 }
 0x6db   : > { %2900 = vmatprep.subr.mxu1 %v4626_v5 }
 0x6dc   : > { %2901 = vmatpush3.msra.mxu1 %v4304_v61 }
 0x6dd   : > { %2902 = vmatprep.subr.mxu1 %v4626_v5 }
 0x6e3   : > { %v3168_v50 = vpop.eup %3167 }
 0x6e4   : > { %v1507_v51 = vsub.f32 1.0, %v3168_v50  ;;  %v1506_v53 = vmul.f32 %v3168_v50, %v1293_v62  ;;  %v4312_v62 = vld [vmem:[#allocation12 + $0x50] sm:$0xff] }
 0x795   : > { %v1500_v45 = vpop.f32.mrf.mxu1 }
 0x796   : > { %v1504_v47 = vadd.f32 %v1500_v45, %v4645_v46 }
 0x797   : > { %v2893_v48 = vpop.f32.mrf.mxu1 }
 0x798   : > { %3169 = vtanh.f32 %v1504_v47 }
 0x7a5   : > { %v3170_v52 = vpop.eup %3169 }
 0x7a6   : > { %v1508_v55 = vmul.f32 %v3170_v52, %v1507_v51  ;;  %v4648_v51 = vld [vmem:[#allocation29_spill] sm:$0xff] }
 0x7a8   : > { %v4254_v56 = vadd.f32 %v1508_v55, %v1506_v53 }
 0x7aa   : > { %2530 = vst [vmem:[%s3635_s29 + $0x18] sm:$0xff] %v4254_v56  ;;  %1613 = vmatmul.mubr.f32.vlgmr.msra.gmra.mxu0 %v4254_v56 }
 0x7ab   : > { %1765 = vmatpush1.msra.mxu0 %v4081_v23  ;;  %1828 = vmatprep.mubr.f32.mxu0 %v4626_v5 }
 0x7ac   : > { %1766 = vmatprep.subr.mxu0 %v4083_v15 }
 0x7ad   : > { %1767 = vmatpush1.msra.mxu0 %v4086_v14 }
 0x7ae   : > { %1768 = vmatprep.subr.mxu0 %v4089_v20 }
 0x7af   : > { %1769 = vmatpush1.msra.mxu0 %v4092_v18 }
 0x7b0   : > { %1770 = vmatprep.subr.mxu0 %v4095_v13 }
 0x7b1   : > { %1771 = vmatpush1.msra.mxu0 %v4098_v8 }
 0x7b2   : > { %1772 = vmatprep.subr.mxu0 %v4101_v25 }
 0x7b3   : > { %1773 = vmatpush1.msra.mxu0 %v4104_v7 }
 0x7b4   : > { %1774 = vmatprep.subr.mxu0 %v4107_v17 }
 0x7b5   : > { %1775 = vmatpush1.msra.mxu0 %v4148_v28 }
 0x7b6   : > { %1776 = vmatprep.subr.mxu0 %v4151_v29 }
 0x7b7   : > { %1777 = vmatpush1.msra.mxu0 %v4154_v30 }
 0x7b8   : > { %1778 = vmatprep.subr.mxu0 %v4157_v31 }
 0x7b9   : > { %1779 = vmatpush1.msra.mxu0 %v4160_v32 }
 0x7ba   : > { %1780 = vmatprep.subr.mxu0 %v4162_v33 }
 0x7bb   : > { %1781 = vmatpush1.msra.mxu0 %v4164_v34 }
 0x7bc   : > { %1782 = vmatprep.subr.mxu0 %v4167_v35 }
 0x7bd   : > { %1783 = vmatpush1.msra.mxu0 %v4170_v39 }
 0x7be   : > { %1784 = vmatprep.subr.mxu0 %v4173_v44 }
 0x7bf   : > { %1785 = vmatpush1.msra.mxu0 %v4176_v49 }
 0x7c0   : > { %1786 = vmatprep.subr.mxu0 %v4179_v54 }
 0x7c1   : > { %1787 = vmatpush1.msra.mxu0 %v4182_v59 }
 0x7c2   : > { %1788 = vmatprep.subr.mxu0 %v4185_v0 }
 0x7c3   : > { %1789 = vmatpush1.msra.mxu0 %v4188_v6 }
 0x7c4   : > { %1790 = vmatprep.subr.mxu0 %v4191_v12 }
 0x7c5   : > { %1791 = vmatpush1.msra.mxu0 %v4194_v37 }
 0x7c6   : > { %1792 = vmatprep.subr.mxu0 %v4197_v38 }
 0x7c7   : > { %1793 = vmatpush1.msra.mxu0 %v4200_v40 }
 0x7c8   : > { %1794 = vmatprep.subr.mxu0 %v4203_v41 }
 0x7c9   : > { %1795 = vmatpush1.msra.mxu0 %v4206_v42 }
 0x7ca   : > { %1980 = vmatprep.subr.mxu0 %v4079_v11  ;;  %v4308_v11 = vld [vmem:[#allocation12 + $0x58] sm:$0xff] }
 0x7cb   : > { %2903 = vmatpush3.msra.mxu1 %v4308_v11 }
 0x7cc   : > { %2904 = vmatprep.subr.mxu1 %v4626_v5 }
 0x7cd   : > { %2905 = vmatpush3.msra.mxu1 %v4312_v62 }
 0x7ce   : > { %2906 = vmatprep.subr.mxu1 %v4626_v5 }
 0x7cf   : > { %2907 = vmatpush3.msra.mxu1 %v4316_v63 }
 0x7d0   : > { %2908 = vmatprep.subr.mxu1 %v4626_v5 }
 0x7d1   : > { %2909 = vmatpush3.msra.mxu1 %v4320_v1 }
 0x7d2   : > { %2910 = vmatprep.subr.mxu1 %v4626_v5 }
 0x7d3   : > { %2911 = vmatpush3.msra.mxu1 %v4324_v2 }
 0x7d4   : > { %2912 = vmatprep.subr.mxu1 %v4626_v5 }
 0x7d5   : > { %2913 = vmatpush3.msra.mxu1 %v4328_v3 }
 0x7d6   : > { %2914 = vmatprep.subr.mxu1 %v4626_v5 }
 0x7d7   : > { %2915 = vmatpush3.msra.mxu1 %v4330_v4 }
 0x7d8   : > { %2916 = vmatprep.subr.mxu1 %v4626_v5 }
 0x7d9   : > { %2917 = vmatpush3.msra.mxu1 %v4334_v27 }
 0x7da   : > { %2918 = vmatprep.subr.mxu1 %v4626_v5 }
 0x7db   : > { %2919 = vmatpush3.msra.mxu1 %v4338_v16 }
 0x7dc   : > { %2920 = vmatprep.subr.mxu1 %v4626_v5 }
 0x7dd   : > { %2921 = vmatpush3.msra.mxu1 %v4342_v26 }
 0x7de   : > { %2922 = vmatprep.subr.mxu1 %v4626_v5 }
 0x7df   : > { %2923 = vmatpush3.msra.mxu1 %v4346_v10 }
 0x7e0   : > { %2924 = vmatprep.subr.mxu1 %v4626_v5 }
 0x7e1   : > { %2925 = vmatpush3.msra.mxu1 %v4350_v19 }
 0x7e2   : > { %2929 = vmatprep.subr.mxu1 %v4626_v5 }
 0x86a   : > { %v1614_v22 = vpop.f32.mrf.mxu0 }
 0x86b   : > { %v1619_v36 = vadd.f32 %v1614_v22, %v4647_v24 }
 0x86c   : > { %v1616_v50 = vpop.f32.mrf.mxu0 }
 0x86d   : > { %v2531_v43 = vmul.f32 -1.442695, %v1619_v36  ;;  %v1620_v52 = vadd.f32 %v1616_v50, %v4648_v51  ;;  %v4649_v36 = vld [vmem:[#allocation40_spill] sm:$0xff]  ;;  %v2185_v50 = vld [vmem:[#allocation10 + $0xa8] sm:$0xff] }
 0x86f   : > { %3171 = vpow2.f32 %v2531_v43  ;;  %v2532_v53 = vmul.f32 -1.442695, %v1620_v52  ;;  %v4654_v52 = vld [vmem:[#allocation32_spill] sm:$0xff] }
 0x87c   : > { %v3172_v45 = vpop.eup %3171 }
 0x87d   : > { %v1627_v46 = vadd.f32 1.0, %v3172_v45 }
 0x87f   : > { %3173 = vrcp.f32 %v1627_v46 }
 0x880   : > { %3175 = vpow2.f32 %v2532_v53 }
 0x88c   : > { %v3174_v47 = vpop.eup %3173 }
 0x88d   : > { %v1633_v48 = vmul.f32 %v3174_v47, %v4254_v56  ;;  %v3176_v55 = vpop.eup %3175 }
 0x88e   : > { %v1628_v22 = vadd.f32 1.0, %v3176_v55 }
 0x88f   : > { %2927 = vmatmul.mubr.f32.vlgmr.msra.gmra.mxu1 %v1633_v48 }
 0x890   : > { %2930 = vmatpush3.msra.mxu1 %v4292_v57  ;;  %2961 = vmatprep.mubr.msk.f32.mxu1 %vm3429_vm0, %v4626_v5  ;;  %3177 = vrcp.f32 %v1628_v22 }
 0x891   : > { %2931 = vmatprep.subr.mxu1 %v4626_v5 }
 0x892   : > { %2932 = vmatpush3.msra.mxu1 %v4296_v58 }
 0x893   : > { %2933 = vmatprep.subr.mxu1 %v4626_v5 }
 0x894   : > { %2934 = vmatpush3.msra.mxu1 %v4300_v60 }
 0x895   : > { %2935 = vmatprep.subr.mxu1 %v4626_v5 }
 0x896   : > { %2936 = vmatpush3.msra.mxu1 %v4304_v61 }
 0x897   : > { %2937 = vmatprep.subr.mxu1 %v4626_v5 }
 0x898   : > { %2938 = vmatpush3.msra.mxu1 %v4308_v11 }
 0x899   : > { %2939 = vmatprep.subr.mxu1 %v4626_v5 }
 0x89a   : > { %2940 = vmatpush3.msra.mxu1 %v4312_v62 }
 0x89b   : > { %2941 = vmatprep.subr.mxu1 %v4626_v5 }
 0x89c   : > { %2942 = vmatpush3.msra.mxu1 %v4316_v63 }
 0x89d   : > { %2943 = vmatprep.subr.mxu1 %v4626_v5  ;;  %v3178_v46 = vpop.eup %3177 }
 0x89e   : > { %2944 = vmatpush3.msra.mxu1 %v4320_v1  ;;  %v1723_v47 = vsub.f32 1.0, %v3178_v46  ;;  %v1722_v21 = vmul.f32 %v3178_v46, %v4254_v56  ;;  %v2187_v56 = vld [vmem:[#allocation10 + $0xb8] sm:$0xff] }
 0x89f   : > { %2945 = vmatprep.subr.mxu1 %v4626_v5  ;;  %v2167_v46 = vld [vmem:[#allocation10 + $0x18] sm:$0xff] }
 0x8a0   : > { %2946 = vmatpush3.msra.mxu1 %v4324_v2 }
 0x8a1   : > { %2947 = vmatprep.subr.mxu1 %v4626_v5 }
 0x8a2   : > { %2948 = vmatpush3.msra.mxu1 %v4328_v3 }
 0x8a3   : > { %2949 = vmatprep.subr.mxu1 %v4626_v5 }
 0x8a4   : > { %2950 = vmatpush3.msra.mxu1 %v4330_v4 }
 0x8a5   : > { %2951 = vmatprep.subr.mxu1 %v4626_v5 }
 0x8a6   : > { %2952 = vmatpush3.msra.mxu1 %v4334_v27 }
 0x8a7   : > { %2953 = vmatprep.subr.mxu1 %v4626_v5 }
 0x8a8   : > { %2954 = vmatpush3.msra.mxu1 %v4338_v16 }
 0x8a9   : > { %2955 = vmatprep.subr.mxu1 %v4626_v5 }
 0x8aa   : > { %2956 = vmatpush3.msra.mxu1 %v4342_v26 }
 0x8ab   : > { %2957 = vmatprep.subr.mxu1 %v4626_v5 }
 0x8ac   : > { %2958 = vmatpush3.msra.mxu1 %v4346_v10 }
 0x8ad   : > { %2959 = vmatprep.subr.mxu1 %v4626_v5 }
 0x8ae   : > { %2960 = vmatpush3.msra.mxu1 %v4350_v19 }
 0x8af   : > { %2964 = vmatprep.subr.mxu1 %v4626_v5 }
 0x94f   : > { %v1716_v24 = vpop.f32.mrf.mxu1 }
 0x950   : > { %v1720_v43 = vadd.f32 %v1716_v24, %v4649_v36 }
 0x951   : > { %v2928_v45 = vpop.f32.mrf.mxu1 }
 0x952   : > { %3179 = vtanh.f32 %v1720_v43  ;;  %v2168_v45 = vld [vmem:[#allocation10 + $0x20] sm:$0xff] }
 0x95f   : > { %v3180_v48 = vpop.eup %3179 }
 0x960   : > { %v1724_v9 = vmul.f32 %v3180_v48, %v1723_v47  ;;  %v2166_v47 = vld [vmem:[#allocation10 + $0x10] sm:$0xff]  ;;  %v2165_v48 = vld [vmem:[#allocation10 + $0x8] sm:$0xff] }
 0x962   : > { %v4395_v19 = vadd.f32 %v1724_v9, %v1722_v21  ;;  %v4650_v21 = vld [vmem:[#allocation30_spill] sm:$0xff] }
 0x964   : > { %2533 = vst [vmem:[%s3635_s29 + $0x20] sm:$0xff] %v4395_v19  ;;  %1829 = vmatmul.mubr.f32.vlgmr.msra.gmra.mxu0 %v4395_v19 }
 0x965   : > { %1981 = vmatpush1.msra.mxu0 %v4081_v23  ;;  %2044 = vmatprep.mubr.f32.mxu0 %v4626_v5 }
 0x966   : > { %1982 = vmatprep.subr.mxu0 %v4083_v15 }
 0x967   : > { %1983 = vmatpush1.msra.mxu0 %v4086_v14 }
 0x968   : > { %1984 = vmatprep.subr.mxu0 %v4089_v20 }
 0x969   : > { %1985 = vmatpush1.msra.mxu0 %v4092_v18 }
 0x96a   : > { %1986 = vmatprep.subr.mxu0 %v4095_v13 }
 0x96b   : > { %1987 = vmatpush1.msra.mxu0 %v4098_v8  ;;  %v4651_v8 = vld [vmem:[#allocation18_spill] sm:$0xff] }
 0x96c   : > { %1988 = vmatprep.subr.mxu0 %v4101_v25 }
 0x96d   : > { %1989 = vmatpush1.msra.mxu0 %v4104_v7  ;;  %v4652_v7 = vld [vmem:[#allocation31_spill] sm:$0xff] }
 0x96e   : > { %1990 = vmatprep.subr.mxu0 %v4107_v17 }
 0x96f   : > { %1991 = vmatpush1.msra.mxu0 %v4148_v28 }
 0x970   : > { %1992 = vmatprep.subr.mxu0 %v4151_v29 }
 0x971   : > { %1993 = vmatpush1.msra.mxu0 %v4154_v30 }
 0x972   : > { %1994 = vmatprep.subr.mxu0 %v4157_v31 }
 0x973   : > { %1995 = vmatpush1.msra.mxu0 %v4160_v32  ;;  %v4653_v32 = vld [vmem:[#allocation39_spill] sm:$0xff] }
 0x974   : > { %1996 = vmatprep.subr.mxu0 %v4162_v33 }
 0x975   : > { %1997 = vmatpush1.msra.mxu0 %v4164_v34 }
 0x976   : > { %1998 = vmatprep.subr.mxu0 %v4167_v35 }
 0x977   : > { %1999 = vmatpush1.msra.mxu0 %v4170_v39 }
 0x978   : > { %2000 = vmatprep.subr.mxu0 %v4173_v44 }
 0x979   : > { %2001 = vmatpush1.msra.mxu0 %v4176_v49 }
 0x97a   : > { %2002 = vmatprep.subr.mxu0 %v4179_v54 }
 0x97b   : > { %2003 = vmatpush1.msra.mxu0 %v4182_v59 }
 0x97c   : > { %2004 = vmatprep.subr.mxu0 %v4185_v0  ;;  %v2195_v0 = vld [vmem:[#allocation10 + $0xf8] sm:$0xff] }
 0x97d   : > { %2005 = vmatpush1.msra.mxu0 %v4188_v6  ;;  %v2194_v6 = vld [vmem:[#allocation10 + $0xf0] sm:$0xff] }
 0x97e   : > { %2006 = vmatprep.subr.mxu0 %v4191_v12  ;;  %v2193_v12 = vld [vmem:[#allocation10 + $0xe8] sm:$0xff] }
 0x97f   : > { %2007 = vmatpush1.msra.mxu0 %v4194_v37  ;;  %v2192_v37 = vld [vmem:[#allocation10 + $0xe0] sm:$0xff] }
 0x980   : > { %2008 = vmatprep.subr.mxu0 %v4197_v38  ;;  %v2191_v38 = vld [vmem:[#allocation10 + $0xd8] sm:$0xff] }
 0x981   : > { %2009 = vmatpush1.msra.mxu0 %v4200_v40  ;;  %v2190_v40 = vld [vmem:[#allocation10 + $0xd0] sm:$0xff] }
 0x982   : > { %2010 = vmatprep.subr.mxu0 %v4203_v41  ;;  %v2189_v41 = vld [vmem:[#allocation10 + $0xc8] sm:$0xff] }
 0x983   : > { %2011 = vmatpush1.msra.mxu0 %v4206_v42  ;;  %v2188_v42 = vld [vmem:[#allocation10 + $0xc0] sm:$0xff] }
 0x984   : > { %2196 = vmatprep.subr.mxu0 %v2195_v0 }
 0xa24   : > { %v1830_v9 = vpop.f32.mrf.mxu0 }
 0xa25   : > { %v1835_v23 = vadd.f32 %v1830_v9, %v4650_v21  ;;  %v2164_v9 = vld [vmem:[#allocation10] sm:$0xff] }
 0xa26   : > { %v1832_v25 = vpop.f32.mrf.mxu0 }
 0xa27   : > { %v2534_v15 = vmul.f32 -1.442695, %v1835_v23  ;;  %v1836_v17 = vadd.f32 %v1832_v25, %v4652_v7  ;;  %v4655_v23 = vld [vmem:[#allocation33_spill] sm:$0xff] }
 0xa29   : > { %3181 = vpow2.f32 %v2534_v15  ;;  %v2535_v28 = vmul.f32 -1.442695, %v1836_v17 }
 0xa36   : > { %v3182_v14 = vpop.eup %3181 }
 0xa37   : > { %v1843_v20 = vadd.f32 1.0, %v3182_v14 }
 0xa39   : > { %3183 = vrcp.f32 %v1843_v20 }
 0xa3a   : > { %3185 = vpow2.f32 %v2535_v28 }
 0xa46   : > { %v3184_v18 = vpop.eup %3183 }
 0xa47   : > { %v1849_v13 = vmul.f32 %v3184_v18, %v4395_v19  ;;  %v3186_v29 = vpop.eup %3185 }
 0xa48   : > { %v1844_v30 = vadd.f32 1.0, %v3186_v29 }
 0xa49   : > { %2962 = vmatmul.mubr.f32.vlgmr.msra.gmra.mxu1 %v1849_v13  ;;  %v4656_v13 = vld [vmem:[#allocation36_spill] sm:$0xff] }
 0xa4a   : > { %2965 = vmatpush3.msra.mxu1 %v4292_v57  ;;  %2996 = vmatprep.mubr.msk.f32.mxu1 %vm3429_vm0, %v4626_v5  ;;  %3187 = vrcp.f32 %v1844_v30 }
 0xa4b   : > { %2966 = vmatprep.subr.mxu1 %v4626_v5 }
 0xa4c   : > { %2967 = vmatpush3.msra.mxu1 %v4296_v58 }
 0xa4d   : > { %2968 = vmatprep.subr.mxu1 %v4626_v5 }
 0xa4e   : > { %2969 = vmatpush3.msra.mxu1 %v4300_v60 }
 0xa4f   : > { %2970 = vmatprep.subr.mxu1 %v4626_v5 }
 0xa50   : > { %2971 = vmatpush3.msra.mxu1 %v4304_v61 }
 0xa51   : > { %2972 = vmatprep.subr.mxu1 %v4626_v5 }
 0xa52   : > { %2973 = vmatpush3.msra.mxu1 %v4308_v11 }
 0xa53   : > { %2974 = vmatprep.subr.mxu1 %v4626_v5 }
 0xa54   : > { %2975 = vmatpush3.msra.mxu1 %v4312_v62 }
 0xa55   : > { %2976 = vmatprep.subr.mxu1 %v4626_v5 }
 0xa56   : > { %2977 = vmatpush3.msra.mxu1 %v4316_v63 }
 0xa57   : > { %2978 = vmatprep.subr.mxu1 %v4626_v5  ;;  %v3188_v35 = vpop.eup %3187 }
 0xa58   : > { %2979 = vmatpush3.msra.mxu1 %v4320_v1  ;;  %v1939_v39 = vsub.f32 1.0, %v3188_v35  ;;  %v1938_v49 = vmul.f32 %v3188_v35, %v4395_v19  ;;  %v2186_v19 = vld [vmem:[#allocation10 + $0xb0] sm:$0xff] }
 0xa59   : > { %2980 = vmatprep.subr.mxu1 %v4626_v5 }
 0xa5a   : > { %2981 = vmatpush3.msra.mxu1 %v4324_v2 }
 0xa5b   : > { %2982 = vmatprep.subr.mxu1 %v4626_v5 }
 0xa5c   : > { %2983 = vmatpush3.msra.mxu1 %v4328_v3 }
 0xa5d   : > { %2984 = vmatprep.subr.mxu1 %v4626_v5 }
 0xa5e   : > { %2985 = vmatpush3.msra.mxu1 %v4330_v4 }
 0xa5f   : > { %2986 = vmatprep.subr.mxu1 %v4626_v5 }
 0xa60   : > { %2987 = vmatpush3.msra.mxu1 %v4334_v27 }
 0xa61   : > { %2988 = vmatprep.subr.mxu1 %v4626_v5 }
 0xa62   : > { %2989 = vmatpush3.msra.mxu1 %v4338_v16 }
 0xa63   : > { %2990 = vmatprep.subr.mxu1 %v4626_v5 }
 0xa64   : > { %2991 = vmatpush3.msra.mxu1 %v4342_v26 }
 0xa65   : > { %2992 = vmatprep.subr.mxu1 %v4626_v5 }
 0xa66   : > { %2993 = vmatpush3.msra.mxu1 %v4346_v10 }
 0xa67   : > { %2994 = vmatprep.subr.mxu1 %v4626_v5 }
 0xa68   : > { %2995 = vmatpush3.msra.mxu1 %v4651_v8 }
 0xa69   : > { %2999 = vmatprep.subr.mxu1 %v4626_v5 }
 0xb09   : > { %v1932_v31 = vpop.f32.mrf.mxu1 }
 0xb0a   : > { %v1936_v33 = vadd.f32 %v1932_v31, %v4653_v32 }
 0xb0b   : > { %v2963_v34 = vpop.f32.mrf.mxu1 }
 0xb0c   : > { %3189 = vtanh.f32 %v1936_v33 }
 0xb19   : > { %v3190_v44 = vpop.eup %3189 }
 0xb1a   : > { %v1940_v54 = vmul.f32 %v3190_v44, %v1939_v39  ;;  %v4658_v39 = vld [vmem:[#allocation34_spill] sm:$0xff] }
 0xb1c   : > { %v4471_v59 = vadd.f32 %v1940_v54, %v1938_v49 }
 0xb1e   : > { %2536 = vst [vmem:[%s3635_s29 + $0x28] sm:$0xff] %v4471_v59  ;;  %2045 = vmatmul.mubr.f32.vlgmr.msra.gmra.mxu0 %v4471_v59 }
 0xb1f   : > { %2260 = vmatprep.mubr.f32.mxu0 %v4626_v5  ;;  %2197 = vmatpush1.msra.mxu0 %v2194_v6 }
 0xb20   : > { %2198 = vmatprep.subr.mxu0 %v2193_v12 }
 0xb21   : > { %2199 = vmatpush1.msra.mxu0 %v2192_v37 }
 0xb22   : > { %2200 = vmatprep.subr.mxu0 %v2191_v38  ;;  %v4659_v38 = vld [vmem:[#allocation35_spill] sm:$0xff] }
 0xb23   : > { %2201 = vmatpush1.msra.mxu0 %v2190_v40 }
 0xb24   : > { %2202 = vmatprep.subr.mxu0 %v2189_v41 }
 0xb25   : > { %2203 = vmatpush1.msra.mxu0 %v2188_v42 }
 0xb26   : > { %2204 = vmatprep.subr.mxu0 %v2187_v56 }
 0xb27   : > { %2205 = vmatpush1.msra.mxu0 %v2186_v19  ;;  %v4660_v19 = vld [vmem:[#allocation41_spill] sm:$0xff] }
 0xb28   : > { %2206 = vmatprep.subr.mxu0 %v2185_v50 }
 0xbde   : > { %v2046_v51 = vpop.f32.mrf.mxu0 }
 0xbdf   : > { %v2051_v53 = vadd.f32 %v2046_v51, %v4654_v52 }
 0xbe0   : > { %v2048_v21 = vpop.f32.mrf.mxu0 }
 0xbe1   : > { %v2537_v55 = vmul.f32 -1.442695, %v2051_v53  ;;  %v2052_v15 = vadd.f32 %v2048_v21, %v4655_v23 }
 0xbe3   : > { %3191 = vpow2.f32 %v2537_v55  ;;  %v2538_v14 = vmul.f32 -1.442695, %v2052_v15 }
 0xbf0   : > { %v3192_v22 = vpop.eup %3191 }
 0xbf1   : > { %v2059_v24 = vadd.f32 1.0, %v3192_v22 }
 0xbf3   : > { %3193 = vrcp.f32 %v2059_v24 }
 0xbf4   : > { %3195 = vpow2.f32 %v2538_v14 }
 0xc00   : > { %v3194_v36 = vpop.eup %3193 }
 0xc01   : > { %v2065_v43 = vmul.f32 %v3194_v36, %v4471_v59  ;;  %v3196_v20 = vpop.eup %3195 }
 0xc02   : > { %v2060_v18 = vadd.f32 1.0, %v3196_v20 }
 0xc03   : > { %2997 = vmatmul.mubr.f32.vlgmr.msra.gmra.mxu1 %v2065_v43 }
 0xc04   : > { %3000 = vmatpush3.msra.mxu1 %v4292_v57  ;;  %3031 = vmatprep.mubr.msk.f32.mxu1 %vm3429_vm0, %v4626_v5  ;;  %v2184_v57 = vld [vmem:[#allocation10 + $0xa0] sm:$0xff]  ;;  %3197 = vrcp.f32 %v2060_v18 }
 0xc05   : > { %3001 = vmatprep.subr.mxu1 %v4626_v5  ;;  %2207 = vmatpush1.msra.mxu0 %v2184_v57 }
 0xc06   : > { %3002 = vmatpush3.msra.mxu1 %v4296_v58  ;;  %v2183_v58 = vld [vmem:[#allocation10 + $0x98] sm:$0xff] }
 0xc07   : > { %3003 = vmatprep.subr.mxu1 %v4626_v5  ;;  %2208 = vmatprep.subr.mxu0 %v2183_v58 }
 0xc08   : > { %3004 = vmatpush3.msra.mxu1 %v4300_v60  ;;  %v2182_v60 = vld [vmem:[#allocation10 + $0x90] sm:$0xff] }
 0xc09   : > { %3005 = vmatprep.subr.mxu1 %v4626_v5  ;;  %2209 = vmatpush1.msra.mxu0 %v2182_v60 }
 0xc0a   : > { %3006 = vmatpush3.msra.mxu1 %v4304_v61  ;;  %v2181_v61 = vld [vmem:[#allocation10 + $0x88] sm:$0xff] }
 0xc0b   : > { %3007 = vmatprep.subr.mxu1 %v4626_v5  ;;  %2210 = vmatprep.subr.mxu0 %v2181_v61 }
 0xc0c   : > { %3008 = vmatpush3.msra.mxu1 %v4308_v11  ;;  %v2180_v11 = vld [vmem:[#allocation10 + $0x80] sm:$0xff] }
 0xc0d   : > { %3009 = vmatprep.subr.mxu1 %v4626_v5  ;;  %2211 = vmatpush1.msra.mxu0 %v2180_v11 }
 0xc0e   : > { %3010 = vmatpush3.msra.mxu1 %v4312_v62  ;;  %v2179_v62 = vld [vmem:[#allocation10 + $0x78] sm:$0xff] }
 0xc0f   : > { %3011 = vmatprep.subr.mxu1 %v4626_v5  ;;  %2212 = vmatprep.subr.mxu0 %v2179_v62 }
 0xc10   : > { %3012 = vmatpush3.msra.mxu1 %v4316_v63  ;;  %v2178_v63 = vld [vmem:[#allocation10 + $0x70] sm:$0xff] }
 0xc11   : > { %3013 = vmatprep.subr.mxu1 %v4626_v5  ;;  %2213 = vmatpush1.msra.mxu0 %v2178_v63  ;;  %v3198_v29 = vpop.eup %3197 }
 0xc12   : > { %3014 = vmatpush3.msra.mxu1 %v4320_v1  ;;  %v2177_v1 = vld [vmem:[#allocation10 + $0x68] sm:$0xff]  ;;  %v2155_v30 = vsub.f32 1.0, %v3198_v29  ;;  %v2154_v32 = vmul.f32 %v3198_v29, %v4471_v59 }
 0xc13   : > { %3015 = vmatprep.subr.mxu1 %v4626_v5  ;;  %2214 = vmatprep.subr.mxu0 %v2177_v1 }
 0xc14   : > { %3016 = vmatpush3.msra.mxu1 %v4324_v2  ;;  %v2176_v2 = vld [vmem:[#allocation10 + $0x60] sm:$0xff] }
 0xc15   : > { %3017 = vmatprep.subr.mxu1 %v4626_v5  ;;  %2215 = vmatpush1.msra.mxu0 %v2176_v2 }
 0xc16   : > { %3018 = vmatpush3.msra.mxu1 %v4328_v3  ;;  %v2175_v3 = vld [vmem:[#allocation10 + $0x58] sm:$0xff] }
 0xc17   : > { %3019 = vmatprep.subr.mxu1 %v4626_v5  ;;  %2216 = vmatprep.subr.mxu0 %v2175_v3 }
 0xc18   : > { %3020 = vmatpush3.msra.mxu1 %v4330_v4  ;;  %v2173_v4 = vld [vmem:[#allocation10 + $0x48] sm:$0xff] }
 0xc19   : > { %3021 = vmatprep.subr.mxu1 %v4626_v5 }
 0xc1a   : > { %3022 = vmatpush3.msra.mxu1 %v4334_v27  ;;  %v2172_v27 = vld [vmem:[#allocation10 + $0x40] sm:$0xff] }
 0xc1b   : > { %3023 = vmatprep.subr.mxu1 %v4626_v5 }
 0xc1c   : > { %3024 = vmatpush3.msra.mxu1 %v4338_v16  ;;  %v2171_v16 = vld [vmem:[#allocation10 + $0x38] sm:$0xff] }
 0xc1d   : > { %3025 = vmatprep.subr.mxu1 %v4626_v5 }
 0xc1e   : > { %3026 = vmatpush3.msra.mxu1 %v4342_v26  ;;  %v2170_v26 = vld [vmem:[#allocation10 + $0x30] sm:$0xff] }
 0xc1f   : > { %3027 = vmatprep.subr.mxu1 %v4626_v5 }
 0xc20   : > { %3028 = vmatpush3.msra.mxu1 %v4346_v10  ;;  %v2169_v10 = vld [vmem:[#allocation10 + $0x28] sm:$0xff] }
 0xc21   : > { %3029 = vmatprep.subr.mxu1 %v4626_v5  ;;  %v2174_v5 = vld [vmem:[#allocation10 + $0x50] sm:$0xff] }
 0xc22   : > { %3030 = vmatpush3.msra.mxu1 %v4651_v8  ;;  %2217 = vmatpush1.msra.mxu0 %v2174_v5  ;;  %v4657_v8 = vld [vmem:[#allocation42_spill] sm:$0xff] }
 0xc23   : > { %2218 = vmatprep.subr.mxu0 %v2173_v4  ;;  %v617_v25 = vadd.f32 %v4657_v8, %v4656_v13 }
 0xc24   : > { %2219 = vmatpush1.msra.mxu0 %v2172_v27 }
 0xc25   : > { %2220 = vmatprep.subr.mxu0 %v2171_v16 }
 0xc26   : > { %2221 = vmatpush1.msra.mxu0 %v2170_v26 }
 0xc27   : > { %2222 = vmatprep.subr.mxu0 %v2169_v10 }
 0xc28   : > { %2223 = vmatpush1.msra.mxu0 %v2168_v45 }
 0xc29   : > { %2224 = vmatprep.subr.mxu0 %v2167_v46 }
 0xc2a   : > { %2225 = vmatpush1.msra.mxu0 %v2166_v47 }
 0xc2b   : > { %2226 = vmatprep.subr.mxu0 %v2165_v48 }
 0xc2c   : > { %2227 = vmatpush1.msra.mxu0 %v2164_v9 }
 0xcc3   : > { %v2148_v7 = vpop.f32.mrf.mxu1 }
 0xcc4   : > { %v2152_v17 = vadd.f32 %v2148_v7, %v617_v25 }
 0xcc5   : > { %v2998_v28 = vpop.f32.mrf.mxu1 }
 0xcc6   : > { %3199 = vtanh.f32 %v2152_v17 }
 0xcd3   : > { %v3200_v31 = vpop.eup %3199 }
 0xcd4   : > { %v2156_v33 = vmul.f32 %v3200_v31, %v2155_v30 }
 0xcd6   : > { %v2157_v34 = vadd.f32 %v2156_v33, %v2154_v32 }
 0xcd8   : > { %2539 = vst [vmem:[%s3635_s29 + $0x30] sm:$0xff] %v2157_v34  ;;  %2261 = vmatmul.mubr.f32.vlgmr.msra.gmra.mxu0 %v2157_v34 }
 0xd98   : > { %v2262_v35 = vpop.f32.mrf.mxu0 }
 0xd99   : > { %v2267_v44 = vadd.f32 %v2262_v35, %v4658_v39 }
 0xd9a   : > { %v2264_v37 = vpop.f32.mrf.mxu0 }
 0xd9b   : > { %v2540_v49 = vmul.f32 -1.442695, %v2267_v44  ;;  %v2268_v59 = vadd.f32 %v2264_v37, %v4659_v38 }
 0xd9d   : > { %3201 = vpow2.f32 %v2540_v49  ;;  %v2541_v40 = vmul.f32 -1.442695, %v2268_v59 }
 0xdaa   : > { %v3202_v54 = vpop.eup %3201 }
 0xdab   : > { %v2275_v0 = vadd.f32 1.0, %v3202_v54 }
 0xdad   : > { %3203 = vrcp.f32 %v2275_v0 }
 0xdae   : > { %3205 = vpow2.f32 %v2541_v40 }
 0xdba   : > { %v3204_v6 = vpop.eup %3203 }
 0xdbb   : > { %v2281_v12 = vmul.f32 %v3204_v6, %v2157_v34  ;;  %v3206_v41 = vpop.eup %3205 }
 0xdbc   : > { %v2276_v42 = vadd.f32 1.0, %v3206_v41 }
 0xdbd   : > { %3032 = vmatmul.mubr.f32.vlgmr.msra.gmra.mxu1 %v2281_v12 }
 0xdbe   : > { %3207 = vrcp.f32 %v2276_v42 }
 0xdcb   : > { %v3208_v52 = vpop.eup %3207 }
 0xdcc   : > { %v2371_v53 = vsub.f32 1.0, %v3208_v52  ;;  %v2370_v22 = vmul.f32 %v3208_v52, %v2157_v34 }
 0xe7d   : > { %v2364_v56 = vpop.f32.mrf.mxu1 }
 0xe7e   : > { %v2368_v50 = vadd.f32 %v2364_v56, %v4660_v19 }
 0xe7f   : > { %v3033_v51 = vpop.f32.mrf.mxu1 }
 0xe80   : > { %3209 = vtanh.f32 %v2368_v50 }
 0xe8d   : > { %v3210_v55 = vpop.eup %3209 }
 0xe8e   : > { %v2372_v24 = vmul.f32 %v3210_v55, %v2371_v53 }
 0xe90   : > { %v2373_v36 = vadd.f32 %v2372_v24, %v2370_v22 }
 0xe92   : > { %2542 = vst [vmem:[%s3635_s29 + $0x38] sm:$0xff] %v2373_v36  ;;  %2376 = vst [vmem:[#allocation2] sm:$0xff] %v2373_v36 }
 0xe93   : > { %3356 = shalt.err (!%p3353_p10)
}
 0xe94   : > { %s3357_s7 = scalar_lea.hbm %s4525_s30, 1024  ;;  %s3361_s27 = scalar_lea.hbm %s4576_s6, 4096 }
 0xe95   : > { %p3358_p6 = scmp.ne.s32.totalorder %s4525_s30, %s3357_s7  ;;  %p3362_p8 = scmp.lt.s32.totalorder %s4525_s30, %s4576_s6 }
 0xe96   : > { %p3363_p1 = scmp.lt.s32.totalorder %s3361_s27, %s3357_s7 }
 0xe97   : > { %p3359_p11 = pnand %p3358_p6, %p4661_p3 }
 0xe98   : > { %p3364_p12 = por %p3363_p1, %p3362_p8 }
 0xe99   : > { %p3360_p0 = pneg %p3359_p11 }
 0xe9b   : > { %p3365_p2 = pnand %p3364_p12, %p3360_p0 }
 0xe9d   : > { %3368 = shalt.err (!%p3365_p2)
}
 0xe9e   : > { %s3431_s19 = smov 128   ;;  %s3432_s14 = smov 8  }
 0xe9f   : > { %3052 = dma.vmem_to_hbm [thread:$0]  (%p4661_p3), %s4527_s17, 1024, %s4525_s30, %s2378_s8, %s3431_s19, %s3431_s19, %s3432_s14  }
 0xea0 PF: > { %p3084_p5 = scmp.ge.s32.totalorder %s3415_s24, 2  ;;  %s2406_s20 = sand.u32 1, %s3403_s21  }
 0xea1   : > { %p4662_p4 = scmp.ne.s32.totalorder %s4593_s28, 0  ;;  %s2407_s25 = scalar_lea.sflag [#allocation6], %s2406_s20 }
 0xea3   : > { %p3072_p9 = pnand %p3084_p5, %p4662_p4 }
 0xea5   : > { %p3073_p7 = pneg %p3072_p9 }
 0xea7   : > { %3398 = dma.done.wait (%p3073_p7), %s2407_s25, 1024  }
 0xea8   : > { %3400 = vsyncadd (%p3073_p7), %s2407_s25, 4294966272  ;;  %p21_p13 = scmp.ge.s32.totalorder %s3559_s18, 6   ;;  %s4663_s21 = smov %s3407_s22 }
 0xea9   : > { %s4664_s22 = smov %s3411_s23  ;;  %s4665_s23 = smov %s3568_s26 }
 0xeaa   : > { %s4666_s24 = smov %s3559_s18  ;;  %23 = sbr.rel (!%p21_p13) target bundleno = 7 (0x7), region = 123 }
 0xeaf   :  { %2412 = vsyncpa [#allocation5], 1 }
 0xeb0   :  { %2414 = vsyncpa [#allocation5 + $0x1], 1 }
 0xeb1   :  { %2415 = vsyncpa [#allocation8], 1 }
 0xeb2   :  { %2416 = vsyncpa [#allocation11], 1 }
 0xeb3   :  { %2417 = vsyncpa [#allocation6], 1 }
 0xeb4   :  { %2419 = vsyncpa [#allocation6 + $0x1], 1 }

</bundles_post_ra>
